<compile_context>
chip_gen: v6e
topology: v6e:2x2x1
jax: 0.10.0
libtpu: 0.0.40
codegen_flags: <defaults>
</compile_context>

<pallas_src>
import functools

import numpy as np
import jax
import jax.numpy as jnp
from jax.experimental import pallas as pl
from jax.experimental.pallas import tpu as pltpu


def _milnce_kernel(anchor_ref, edges_ref, w_ref, b_ref, out_ref, *, k, d, tau, beta):
    a = anchor_ref[...]                                # (bs, node_dim)       mxu_dtype
    W = w_ref[...]                                     # (node_dim, edge_dim) mxu_dtype
    # Edges may be streamed in bf16 (half the bytes of the dominant HBM
    # stream); all elementwise math below is f32.
    ed = edges_ref[...].astype(jnp.float32)            # (bs, k*d, edge_dim)  f32
    b = b_ref[0]                                       # scalar bias (SMEM)

    # MXU: anchor @ W with f32 accumulation (bf16-fed on v6e/v7x when requested).
    aw = jnp.dot(a, W, preferred_element_type=jnp.float32)        # (bs, edge_dim) f32

    # Bilinear discriminator z[i, jm] = aw[i] . ed[i, jm] + b
    # (VPU multiply + lane-axis reduce; edge_dim = 32 here).
    # TODO(synk): for edge_dim >> 32, switch to a batched lax.dot_general
    # ('be,bne->bn') so the contraction can stay on the MXU/accumulate path.
    z = jnp.sum(aw[:, None, :] * ed, axis=-1) + b                 # (bs, k*d) f32

    # f(sigmoid(.), tau) = exp(sigmoid(.)/tau)   (EUP)
    s = jnp.exp(jax.nn.sigmoid(z) * (1.0 / tau))                  # (bs, k*d)

    # Per-hop score[i, j] = sum of the d contrast edges of hop j.
    # Statically unrolled over tiny k, d — no iota/G matrix, no 128-padded matmul.
    score = [jnp.sum(s[:, j * d:(j + 1) * d], axis=-1, keepdims=True)
             for j in range(k)]                                   # k x (bs, 1)

    # Suffix sums suffix[j] = sum_{j' >= j} score[j']  (k-1 unrolled adds).
    suffix = [None] * k
    suffix[k - 1] = score[k - 1]
    for j in range(k - 2, -1, -1):
        suffix[j] = score[j] + suffix[j + 1]

    # Listwise loss, hops j = 0 .. k-2 only, divided by (k-1).
    per_sample = -jnp.log(jnp.minimum(score[0] / suffix[0], beta))
    for j in range(1, k - 1):
        per_sample = per_sample - jnp.log(jnp.minimum(score[j] / suffix[j], beta))
    per_sample = per_sample * (1.0 / (k - 1))                     # (bs, 1)

    # Single per-block loss sum -> one tiny store per block.
    out_ref[...] = jnp.sum(per_sample, axis=0, keepdims=True)     # (1, 1)


def _pick_block_rows(S, kd, edge_dim, node_dim, *, edge_bytes=4, node_bytes=4,
                     vmem_budget_bytes=24 << 20, min_blocks=1):
    """Largest sample block that (a) keeps the double-buffered input streams
    within the VMEM budget, (b) divides S, and (c) leaves >= min_blocks grid
    steps.  On v7x pass a smaller budget (64 MiB physical VMEM) and
    min_blocks=2 so both TensorCores get work; on 1-TC v5e/v6e prefer
    min_blocks=1 (grid=1 whenever the hop fits)."""
    per_row = 2 * (kd * edge_dim * edge_bytes + node_dim * node_bytes)  # double-buffered
    cap = max(8, min(S // max(min_blocks, 1), vmem_budget_bytes // per_row))
    if cap >= S and min_blocks <= 1:
        return S                                     # whole hop in one grid step
    cand = min(cap, S)
    cand -= cand % 8                                 # keep the sublane dim 8-aligned
    while cand >= 8:
        if S % cand == 0:
            return cand
        cand -= 8
    return S                                         # fallback: single big block


def milnce_hop_loss_sum(anchors, edges_flat, W, bias, *, k, d, tau, beta,
                        block_s, vmem_budget_bytes=24 << 20):
    """Sum over samples of the listwise loss for one hop-count k (scalar)."""
    S, node_dim = anchors.shape
    edge_dim = edges_flat.shape[-1]
    assert k >= 2, "listwise loss needs k >= 2 (divides by k - 1)"
    assert S % block_s == 0, "sample block must divide the per-hop sample count"
    assert block_s == S or block_s % 8 == 0, "sample block must be 8-aligned"
    num_blocks = S // block_s

    kernel = functools.partial(_milnce_kernel, k=k, d=d,
                               tau=float(tau), beta=float(beta))

    out = pl.pallas_call(
        kernel,
        out_shape=jax.ShapeDtypeStruct((num_blocks, 1), jnp.float32),
        grid_spec=pltpu.PrefetchScalarGridSpec(
            num_scalar_prefetch=0,
            grid=(num_blocks,),
            in_specs=[
                pl.BlockSpec((block_s, node_dim), lambda i: (i, 0)),
                pl.BlockSpec((block_s, k * d, edge_dim), lambda i: (i, 0, 0)),
                pl.BlockSpec((node_dim, edge_dim), lambda i: (0, 0)),
                pl.BlockSpec(memory_space=pltpu.MemorySpace.SMEM),
            ],
            out_specs=pl.BlockSpec((1, 1), lambda i: (i, 0)),
        ),
        compiler_params=pltpu.CompilerParams(
            dimension_semantics=("parallel",),
            # budget + headroom; within physical VMEM on v5e/v6e (128 MiB)
            # and v7x (64 MiB) for the default 24 MiB budget.
            vmem_limit_bytes=int(vmem_budget_bytes) + (8 << 20)),
    )(anchors, edges_flat, W, bias)
    return jnp.sum(out)


def milnce_forward(n, e, hop_hyperedge, hop_hypernode, W, bias, *, d, tau, beta,
                   mean=True, mxu_dtype=jnp.float32, edge_dtype=jnp.float32,
                   vmem_budget_bytes=24 << 20, min_blocks=1):
    """MILNCELoss.forward.  mxu_dtype=bfloat16 feeds the a@W matmul (and the
    anchor/W HBM streams) in bf16 on v6e/v7x; edge_dtype=bfloat16 halves the
    dominant edge HBM stream; all elementwise math stays f32."""
    total = jnp.zeros((), jnp.float32)
    count = 0
    W_m = W.astype(mxu_dtype)
    bias_f32 = bias.astype(jnp.float32)
    edge_bytes = jnp.dtype(edge_dtype).itemsize
    node_bytes = jnp.dtype(mxu_dtype).itemsize
    for k in sorted(hop_hypernode.keys()):
        node_idx = hop_hypernode[k]                              # (S,)
        edge_idx = hop_hyperedge[k]                              # (S, k, d)
        S = int(node_idx.shape[0])
        # Gather glue (plain JAX) — see TODO(synk) at the top of the file.
        anchors = n[node_idx].astype(mxu_dtype)                            # (S, node_dim)
        edges_flat = e[edge_idx.reshape(S, k * d)].astype(edge_dtype)      # (S, k*d, edge_dim)
        block_s = _pick_block_rows(S, k * d, edges_flat.shape[-1], n.shape[-1],
                                   edge_bytes=edge_bytes, node_bytes=node_bytes,
                                   vmem_budget_bytes=vmem_budget_bytes,
                                   min_blocks=min_blocks)
        total = total + milnce_hop_loss_sum(
            anchors, edges_flat, W_m, bias_f32, k=k, d=d, tau=tau, beta=beta,
            block_s=block_s, vmem_budget_bytes=vmem_budget_bytes)
        count += S
    return total / count if mean else total


def milnce_reference(n, e, hop_hyperedge, hop_hypernode, W, bias, *, d, tau, beta, mean=True):
    """Pure-JAX reference mirroring the PyTorch module (for verification)."""
    losses = []
    for k in sorted(hop_hypernode.keys()):
        anchor = n[hop_hypernode[k]]                       # (S, node_dim)
        edges = e[hop_hyperedge[k]]                        # (S, k, d, edge_dim)
        z = jnp.einsum("sp,pq,skdq->skd", anchor, W, edges) + bias[0]
        s = jnp.exp(jax.nn.sigmoid(z) / tau)
        score = s.sum(axis=-1)                             # (S, k)
        loss_k = jnp.zeros((score.shape[0],), jnp.float32)
        for j in range(k - 1):
            loss_k = loss_k - jnp.log(
                jnp.minimum(score[:, j] / score[:, j:].sum(axis=-1), beta))
        losses.append(loss_k / (k - 1))
    all_losses = jnp.concatenate(losses)
    return all_losses.mean() if mean else all_losses.sum()


if __name__ == "__main__":
    key = jax.random.PRNGKey(0)
    keys = jax.random.split(key, 8)

    node_dim, edge_dim = 32, 32
    num_nodes, num_edges = 64, 48
    d, tau, beta = 4, 0.5, 0.9
    hop_ks = (2, 3)
    S = 16                       # samples per hop-count (whole hop = one grid step)

    n = jax.random.normal(keys[0], (num_nodes, node_dim), jnp.float32)
    e = jax.random.normal(keys[1], (num_edges, edge_dim), jnp.float32)

    # nn.Bilinear(node_dim, edge_dim, 1): weight (1, node_dim, edge_dim), bias (1,)
    bound = 1.0 / np.sqrt(node_dim)
    W = jax.random.uniform(keys[2], (node_dim, edge_dim), jnp.float32, -bound, bound)
    bias = jax.random.uniform(keys[3], (1,), jnp.float32, -bound, bound)

    hop_hypernode, hop_hyperedge = {}, {}
    for idx, k in enumerate(hop_ks):
        hop_hypernode[k] = jax.random.randint(keys[4 + idx], (S,), 0, num_nodes)
        hop_hyperedge[k] = jax.random.randint(keys[6 + idx], (S, k, d), 0, num_edges)

    # f32 feed everywhere: faithful to the PyTorch module; strict check.  Both
    # hop launches are fused under one jit.
    fwd_f32 = jax.jit(functools.partial(
        milnce_forward, d=d, tau=tau, beta=beta, mean=True,
        mxu_dtype=jnp.float32, edge_dtype=jnp.float32))
    loss = jax.block_until_ready(fwd_f32(n, e, hop_hyperedge, hop_hypernode, W, bias))

    ref = milnce_reference(n, e, hop_hyperedge, hop_hypernode, W, bias,
                           d=d, tau=tau, beta=beta, mean=True)
    np.testing.assert_allclose(np.asarray(loss), np.asarray(ref), rtol=1e-3, atol=1e-5)

    # bf16 feed (v6e/v7x recommendation): anchors/W in bf16 for the MXU, edges
    # streamed in bf16 (half the dominant HBM stream), f32 accumulate and f32
    # elementwise path; looser tolerance accounts for the bf16 casts.
    fwd_bf16 = jax.jit(functools.partial(
        milnce_forward, d=d, tau=tau, beta=beta, mean=True,
        mxu_dtype=jnp.bfloat16, edge_dtype=jnp.bfloat16))
    loss_bf16 = jax.block_until_ready(
        fwd_bf16(n, e, hop_hyperedge, hop_hypernode, W, bias))
    np.testing.assert_allclose(np.asarray(loss_bf16), np.asarray(ref),
                               rtol=5e-2, atol=5e-2)

    print("KERNEL_OK")
</pallas_src>

<mosaic_0001>
module attributes {stable_mosaic.version = 11 : i64} {
  func.func @_milnce_kernel(%arg0: i32, %arg1: memref<16x32xf32, #tpu.memory_space<vmem>>, %arg2: memref<16x8x32xf32, #tpu.memory_space<vmem>>, %arg3: memref<32x32xf32, #tpu.memory_space<vmem>>, %arg4: memref<1xf32, #tpu.memory_space<smem>>, %arg5: memref<1x1xf32, #tpu.memory_space<vmem>>) attributes {dimension_semantics = [#tpu.dimension_semantics<parallel>], iteration_bounds = array<i64: 1>, scalar_prefetch = 0 : i64, scratch_operands = 0 : i64, tpu.core_type = #tpu.core_type<tc>, window_params = [{transform_indices = @transform_0, window_bounds = array<i64: 16, 32>}, {transform_indices = @transform_1, window_bounds = array<i64: 16, 8, 32>}, {pipeline_mode = #tpu.pipeline_mode<synchronous>, transform_indices = @transform_2, window_bounds = array<i64: 32, 32>}, {transform_indices = @transform_3, window_bounds = array<i64: 1>}, {transform_indices = @transform_4, window_bounds = array<i64: 1, 1>}]} {
    %c0 = arith.constant 0 : index
    %c0_0 = arith.constant 0 : index
    %0 = vector.load %arg1[%c0, %c0_0] : memref<16x32xf32, #tpu.memory_space<vmem>>, vector<16x32xf32>
    %c0_1 = arith.constant 0 : index
    %c0_2 = arith.constant 0 : index
    %1 = vector.load %arg3[%c0_1, %c0_2] : memref<32x32xf32, #tpu.memory_space<vmem>>, vector<32x32xf32>
    %c0_3 = arith.constant 0 : index
    %c0_4 = arith.constant 0 : index
    %c0_5 = arith.constant 0 : index
    %2 = vector.load %arg2[%c0_3, %c0_4, %c0_5] : memref<16x8x32xf32, #tpu.memory_space<vmem>>, vector<16x8x32xf32>
    %c0_6 = arith.constant 0 : index
    %3 = memref.load %arg4[%c0_6] : memref<1xf32, #tpu.memory_space<smem>>
    %cst = arith.constant dense<0.000000e+00> : vector<16x32xf32>
    %4 = tpu.matmul %0, %1, %cst {dimension_numbers = #tpu.dot_dimension_numbers<[1], [0], [0], [1], [0, 0, 1, 1], [], []>} : vector<16x32xf32>, vector<32x32xf32>, vector<16x32xf32> -> vector<16x32xf32>
    %5 = vector.shape_cast %4 : vector<16x32xf32> to vector<16x1x32xf32>
    %6 = vector.broadcast %5 : vector<16x1x32xf32> to vector<16x8x32xf32>
    %7 = arith.mulf %6, %2 : vector<16x8x32xf32>
    %cst_7 = arith.constant dense<0.000000e+00> : vector<16x8xf32>
    %8 = vector.multi_reduction <add>, %7, %cst_7 [2] : vector<16x8x32xf32> to vector<16x8xf32>
    %9 = vector.broadcast %3 : f32 to vector<16x8xf32>
    %10 = arith.addf %8, %9 : vector<16x8xf32>
    %11 = arith.negf %10 : vector<16x8xf32>
    %12 = math.exp %11 : vector<16x8xf32>
    %cst_8 = arith.constant 1.000000e+00 : f32
    %13 = vector.broadcast %cst_8 : f32 to vector<16x8xf32>
    %14 = arith.addf %13, %12 : vector<16x8xf32>
    %15 = arith.divf %13, %14 : vector<16x8xf32>
    %cst_9 = arith.constant 2.000000e+00 : f32
    %16 = vector.broadcast %cst_9 : f32 to vector<16x8xf32>
    %17 = arith.mulf %15, %16 : vector<16x8xf32>
    %18 = math.exp %17 : vector<16x8xf32>
    %19 = vector.extract_strided_slice %18 {offsets = [0, 0], sizes = [16, 4], strides = [1, 1]} : vector<16x8xf32> to vector<16x4xf32>
    %cst_10 = arith.constant dense<0.000000e+00> : vector<16xf32>
    %20 = vector.multi_reduction <add>, %19, %cst_10 [1] : vector<16x4xf32> to vector<16xf32>
    %21 = vector.shape_cast %20 : vector<16xf32> to vector<16x1xf32>
    %22 = vector.extract_strided_slice %18 {offsets = [0, 4], sizes = [16, 4], strides = [1, 1]} : vector<16x8xf32> to vector<16x4xf32>
    %cst_11 = arith.constant dense<0.000000e+00> : vector<16xf32>
    %23 = vector.multi_reduction <add>, %22, %cst_11 [1] : vector<16x4xf32> to vector<16xf32>
    %24 = vector.shape_cast %23 : vector<16xf32> to vector<16x1xf32>
    %25 = arith.addf %21, %24 : vector<16x1xf32>
    %26 = arith.divf %21, %25 : vector<16x1xf32>
    %cst_12 = arith.constant 0.899999976 : f32
    %27 = vector.broadcast %cst_12 : f32 to vector<16x1xf32>
    %28 = arith.minimumf %26, %27 : vector<16x1xf32>
    %29 = math.log %28 : vector<16x1xf32>
    %cst_13 = arith.constant 0.000000e+00 : f32
    %30 = vector.broadcast %cst_13 : f32 to vector<16x1xf32>
    %31 = arith.subf %30, %29 : vector<16x1xf32>
    %cst_14 = arith.constant 1.000000e+00 : f32
    %32 = vector.broadcast %cst_14 : f32 to vector<16x1xf32>
    %33 = arith.mulf %31, %32 : vector<16x1xf32>
    %cst_15 = arith.constant dense<0.000000e+00> : vector<1xf32>
    %34 = vector.multi_reduction <add>, %33, %cst_15 [0] : vector<16x1xf32> to vector<1xf32>
    %35 = vector.shape_cast %34 : vector<1xf32> to vector<1x1xf32>
    %c0_16 = arith.constant 0 : index
    %c0_17 = arith.constant 0 : index
    %36 = vector.load %arg5[%c0_16, %c0_17] : memref<1x1xf32, #tpu.memory_space<vmem>>, vector<1x1xf32>
    tpu.vector_store %arg5[%c0_16, %c0_17], %35 {strides = array<i32>} : memref<1x1xf32, #tpu.memory_space<vmem>>, vector<1x1xf32>,
    return
  }
  func.func @transform_0(%arg0: i32) -> (i32, i32) {
    %c0_i32 = arith.constant 0 : i32
    %c0_i32_0 = arith.constant 0 : i32
    return %arg0, %c0_i32 : i32, i32
  }
  func.func @transform_1(%arg0: i32) -> (i32, i32, i32) {
    %c0_i32 = arith.constant 0 : i32
    %c0_i32_0 = arith.constant 0 : i32
    %c0_i32_1 = arith.constant 0 : i32
    return %arg0, %c0_i32, %c0_i32_0 : i32, i32, i32
  }
  func.func @transform_2(%arg0: i32) -> (i32, i32) {
    %c0_i32 = arith.constant 0 : i32
    %c0_i32_0 = arith.constant 0 : i32
    %c0_i32_1 = arith.constant 0 : i32
    return %c0_i32, %c0_i32_0 : i32, i32
  }
  func.func @transform_3(%arg0: i32) -> i32 {
    %c0_i32 = arith.constant 0 : i32
    %c0_i32_0 = arith.constant 0 : i32
    return %c0_i32 : i32
  }
  func.func @transform_4(%arg0: i32) -> (i32, i32) {
    %c0_i32 = arith.constant 0 : i32
    %c0_i32_0 = arith.constant 0 : i32
    return %arg0, %c0_i32 : i32, i32
  }
}

module attributes {stable_mosaic.version = 11 : i64} {
  func.func @_milnce_kernel(%arg0: i32, %arg1: memref<16x32xf32, #tpu.memory_space<vmem>>, %arg2: memref<16x12x32xf32, #tpu.memory_space<vmem>>, %arg3: memref<32x32xf32, #tpu.memory_space<vmem>>, %arg4: memref<1xf32, #tpu.memory_space<smem>>, %arg5: memref<1x1xf32, #tpu.memory_space<vmem>>) attributes {dimension_semantics = [#tpu.dimension_semantics<parallel>], iteration_bounds = array<i64: 1>, scalar_prefetch = 0 : i64, scratch_operands = 0 : i64, tpu.core_type = #tpu.core_type<tc>, window_params = [{transform_indices = @transform_0, window_bounds = array<i64: 16, 32>}, {transform_indices = @transform_1, window_bounds = array<i64: 16, 12, 32>}, {pipeline_mode = #tpu.pipeline_mode<synchronous>, transform_indices = @transform_2, window_bounds = array<i64: 32, 32>}, {transform_indices = @transform_3, window_bounds = array<i64: 1>}, {transform_indices = @transform_4, window_bounds = array<i64: 1, 1>}]} {
    %c0 = arith.constant 0 : index
    %c0_0 = arith.constant 0 : index
    %0 = vector.load %arg1[%c0, %c0_0] : memref<16x32xf32, #tpu.memory_space<vmem>>, vector<16x32xf32>
    %c0_1 = arith.constant 0 : index
    %c0_2 = arith.constant 0 : index
    %1 = vector.load %arg3[%c0_1, %c0_2] : memref<32x32xf32, #tpu.memory_space<vmem>>, vector<32x32xf32>
    %c0_3 = arith.constant 0 : index
    %c0_4 = arith.constant 0 : index
    %c0_5 = arith.constant 0 : index
    %2 = vector.load %arg2[%c0_3, %c0_4, %c0_5] : memref<16x12x32xf32, #tpu.memory_space<vmem>>, vector<16x12x32xf32>
    %c0_6 = arith.constant 0 : index
    %3 = memref.load %arg4[%c0_6] : memref<1xf32, #tpu.memory_space<smem>>
    %cst = arith.constant dense<0.000000e+00> : vector<16x32xf32>
    %4 = tpu.matmul %0, %1, %cst {dimension_numbers = #tpu.dot_dimension_numbers<[1], [0], [0], [1], [0, 0, 1, 1], [], []>} : vector<16x32xf32>, vector<32x32xf32>, vector<16x32xf32> -> vector<16x32xf32>
    %5 = vector.shape_cast %4 : vector<16x32xf32> to vector<16x1x32xf32>
    %6 = vector.broadcast %5 : vector<16x1x32xf32> to vector<16x12x32xf32>
    %7 = arith.mulf %6, %2 : vector<16x12x32xf32>
    %cst_7 = arith.constant dense<0.000000e+00> : vector<16x12xf32>
    %8 = vector.multi_reduction <add>, %7, %cst_7 [2] : vector<16x12x32xf32> to vector<16x12xf32>
    %9 = vector.broadcast %3 : f32 to vector<16x12xf32>
    %10 = arith.addf %8, %9 : vector<16x12xf32>
    %11 = arith.negf %10 : vector<16x12xf32>
    %12 = math.exp %11 : vector<16x12xf32>
    %cst_8 = arith.constant 1.000000e+00 : f32
    %13 = vector.broadcast %cst_8 : f32 to vector<16x12xf32>
    %14 = arith.addf %13, %12 : vector<16x12xf32>
    %15 = arith.divf %13, %14 : vector<16x12xf32>
    %cst_9 = arith.constant 2.000000e+00 : f32
    %16 = vector.broadcast %cst_9 : f32 to vector<16x12xf32>
    %17 = arith.mulf %15, %16 : vector<16x12xf32>
    %18 = math.exp %17 : vector<16x12xf32>
    %19 = vector.extract_strided_slice %18 {offsets = [0, 0], sizes = [16, 4], strides = [1, 1]} : vector<16x12xf32> to vector<16x4xf32>
    %cst_10 = arith.constant dense<0.000000e+00> : vector<16xf32>
    %20 = vector.multi_reduction <add>, %19, %cst_10 [1] : vector<16x4xf32> to vector<16xf32>
    %21 = vector.shape_cast %20 : vector<16xf32> to vector<16x1xf32>
    %22 = vector.extract_strided_slice %18 {offsets = [0, 4], sizes = [16, 4], strides = [1, 1]} : vector<16x12xf32> to vector<16x4xf32>
    %cst_11 = arith.constant dense<0.000000e+00> : vector<16xf32>
    %23 = vector.multi_reduction <add>, %22, %cst_11 [1] : vector<16x4xf32> to vector<16xf32>
    %24 = vector.shape_cast %23 : vector<16xf32> to vector<16x1xf32>
    %25 = vector.extract_strided_slice %18 {offsets = [0, 8], sizes = [16, 4], strides = [1, 1]} : vector<16x12xf32> to vector<16x4xf32>
    %cst_12 = arith.constant dense<0.000000e+00> : vector<16xf32>
    %26 = vector.multi_reduction <add>, %25, %cst_12 [1] : vector<16x4xf32> to vector<16xf32>
    %27 = vector.shape_cast %26 : vector<16xf32> to vector<16x1xf32>
    %28 = arith.addf %24, %27 : vector<16x1xf32>
    %29 = arith.addf %21, %28 : vector<16x1xf32>
    %30 = arith.divf %21, %29 : vector<16x1xf32>
    %cst_13 = arith.constant 0.899999976 : f32
    %31 = vector.broadcast %cst_13 : f32 to vector<16x1xf32>
    %32 = arith.minimumf %30, %31 : vector<16x1xf32>
    %33 = math.log %32 : vector<16x1xf32>
    %cst_14 = arith.constant 0.000000e+00 : f32
    %34 = vector.broadcast %cst_14 : f32 to vector<16x1xf32>
    %35 = arith.subf %34, %33 : vector<16x1xf32>
    %36 = arith.divf %24, %28 : vector<16x1xf32>
    %cst_15 = arith.constant 0.899999976 : f32
    %37 = vector.broadcast %cst_15 : f32 to vector<16x1xf32>
    %38 = arith.minimumf %36, %37 : vector<16x1xf32>
    %39 = math.log %38 : vector<16x1xf32>
    %40 = arith.subf %35, %39 : vector<16x1xf32>
    %cst_16 = arith.constant 5.000000e-01 : f32
    %41 = vector.broadcast %cst_16 : f32 to vector<16x1xf32>
    %42 = arith.mulf %40, %41 : vector<16x1xf32>
    %cst_17 = arith.constant dense<0.000000e+00> : vector<1xf32>
    %43 = vector.multi_reduction <add>, %42, %cst_17 [0] : vector<16x1xf32> to vector<1xf32>
    %44 = vector.shape_cast %43 : vector<1xf32> to vector<1x1xf32>
    %c0_18 = arith.constant 0 : index
    %c0_19 = arith.constant 0 : index
    %45 = vector.load %arg5[%c0_18, %c0_19] : memref<1x1xf32, #tpu.memory_space<vmem>>, vector<1x1xf32>
    tpu.vector_store %arg5[%c0_18, %c0_19], %44 {strides = array<i32>} : memref<1x1xf32, #tpu.memory_space<vmem>>, vector<1x1xf32>,
    return
  }
  func.func @transform_0(%arg0: i32) -> (i32, i32) {
    %c0_i32 = arith.constant 0 : i32
    %c0_i32_0 = arith.constant 0 : i32
    return %arg0, %c0_i32 : i32, i32
  }
  func.func @transform_1(%arg0: i32) -> (i32, i32, i32) {
    %c0_i32 = arith.constant 0 : i32
    %c0_i32_0 = arith.constant 0 : i32
    %c0_i32_1 = arith.constant 0 : i32
    return %arg0, %c0_i32, %c0_i32_0 : i32, i32, i32
  }
  func.func @transform_2(%arg0: i32) -> (i32, i32) {
    %c0_i32 = arith.constant 0 : i32
    %c0_i32_0 = arith.constant 0 : i32
    %c0_i32_1 = arith.constant 0 : i32
    return %c0_i32, %c0_i32_0 : i32, i32
  }
  func.func @transform_3(%arg0: i32) -> i32 {
    %c0_i32 = arith.constant 0 : i32
    %c0_i32_0 = arith.constant 0 : i32
    return %c0_i32 : i32
  }
  func.func @transform_4(%arg0: i32) -> (i32, i32) {
    %c0_i32 = arith.constant 0 : i32
    %c0_i32_0 = arith.constant 0 : i32
    return %arg0, %c0_i32 : i32, i32
  }
}

</mosaic_0001>

<bundles_post_ra>
// kernel: milnce_forward.2
= control target key start
LH: loop header
LB: loop body
LE: loop exit
PB: predicated region body
PF: predicated region fallthrough
CT: control target
= control target key end

     0   :  { %vm42_vm0 = vcmask 261120   ;;  %s1163_s0 = inlined_call_operand.vmem [shape: f32[16,32], index: 0, kind: input, shape index: {}]   ;;  %s1164_s1 = inlined_call_operand.vmem [shape: f32[16,8,32], index: 1, kind: input, shape index: {}]   ;;  %s1165_s2 = inlined_call_operand.vmem [shape: f32[32,32], index: 2, kind: input, shape index: {}]   ;;  %s1166_s3 = inlined_call_operand.<no memory space> [shape: f32[1], index: 3, kind: input, shape index: {}]   ;;  %s1167_s4 = inlined_call_operand.hbm [shape: f32[1,1], index: 4, kind: output, shape index: {}]  }
   0x1   :  { %v24_v0 = vld [vmem:[%s1165_s2 + $0x18] sm:$0xff]  ;;  %v23_v1 = vld [vmem:[%s1165_s2 + $0x10] sm:$0xff]  ;;  %v19_v2 = vld [vmem:[%s1163_s0] sm:$0xff] }
   0x2   :  { %789 = vmatprep.subr.mxu0 %v24_v0  ;;  %v22_v3 = vld [vmem:[%s1165_s2 + $0x8] sm:$0xff]  ;;  %797 = vmatprep.mubr.msk.f32.mxu0 %vm42_vm0, %v19_v2 }
   0x3   :  { %790 = vmatpush3.msra.mxu0 %v24_v0 }
   0x4   :  { %10 = vsyncpa [#allocation4], 0  ;;  %791 = vmatprep.subr.mxu0 %v23_v1  ;;  %v21_v4 = vld [vmem:[%s1165_s2] sm:$0xff]  ;;  %v20_v5 = vld [vmem:[%s1163_s0 + $0x8] sm:$0xff]  ;;  %v130_v6 = vlaneseq  ;;  %v928_v12 = vmov 1966171168  }
   0x5   :  { %792 = vmatpush3.msra.mxu0 %v23_v1  ;;  %v128_v13 = vunpack.c.l.s4 %v928_v12  ;;  %v33_v29 = vld [vmem:[%s1164_s1 + $0x40] sm:$0xff]  ;;  %v34_v35 = vld [vmem:[%s1164_s1 + $0x48] sm:$0xff]  ;;  %v35_v47 = vld [vmem:[%s1164_s1 + $0x50] sm:$0xff]  ;;  %vm611_vm1 = vcmask 1041409   ;;  %vm613_vm2 = vcmask 1042434   ;;  %vm615_vm3 = vcmask 1043459  }
   0x6   :  { %793 = vmatprep.subr.mxu0 %v22_v3  ;;  %v131_v7 = vshrl.u32 %v130_v6, 7  ;;  %v546_v8 = vand.u32 127, %v130_v6  ;;  %v25_v34 = vld [vmem:[%s1164_s1] sm:$0xff]  ;;  %v26_v41 = vld [vmem:[%s1164_s1 + $0x8] sm:$0xff]  ;;  %v27_v53 = vld [vmem:[%s1164_s1 + $0x10] sm:$0xff]  ;;  %vm617_vm4 = vcmask 1044484  }
   0x7   :  { %794 = vmatpush3.msra.mxu0 %v22_v3  ;;  %v129_v14 = vunpack.c.0.s8 %v128_v13  ;;  %v37_v59 = vld [vmem:[%s1164_s1 + $0x60] sm:$0xff]  ;;  %v28_v12 = vld [vmem:[%s1164_s1 + $0x18] sm:$0xff]  ;;  %vm619_vm5 = vcmask 1045509   ;;  %vm621_vm6 = vcmask 1046534   ;;  %vm623_vm7 = vcmask 1047559  }
   0x8   :  { %795 = vmatprep.subr.mxu0 %v21_v4  ;;  %v975_v9 = vsub.s32 %v546_v8, %v131_v7  ;;  %v641_v10 = vadd.s32 4, %v546_v8  ;;  %v982_v19 = vsub.s32 0, %v131_v7  ;;  %v29_v0 = vld [vmem:[%s1164_s1 + $0x20] sm:$0xff]  ;;  %vm634_vm8 = vcmask 31744  }
   0x9   :  { %796 = vmatpush3.msra.mxu0 %v21_v4  ;;  %v979_v15 = vsub.s32 %v129_v14, %v131_v7  ;;  %vm749_vm9 = vcmask 0  }
   0xa   :  { %798 = vmatmul.mubr.msk.f32.vlgmr.msra.gmra.mxu0 %vm42_vm0, %v20_v5  ;;  %v977_v11 = vsub.s32 %v641_v10, %v131_v7  ;;  %v36_v5 = vld [vmem:[%s1164_s1 + $0x58] sm:$0xff] }
  0xca   :  { %v799_v16 = vpop.f32.mrf.mxu0 }
  0xcb   :  { %v182_v17 = vrot.slane %v799_v16, %v979_v15  ;;  %v175_v18 = vcombine.high %v799_v16, %v799_v16 }
  0xcc   :  { %v115_v20 = vpop.f32.mrf.mxu0 }
  0xcd   :  { %v190_v21 = vcombine.high %v182_v17, %v182_v17  ;;  %v198_v22 = vrot.slane %v182_v17, %v979_v15  ;;  %v133_v23 = vrot.slane %v115_v20, %v979_v15  ;;  %v126_v25 = vcombine.high %v115_v20, %v115_v20 }
  0xce   :  { %v189_v26 = vrot.slane %v175_v18, %v979_v15  ;;  %v38_v18 = vld [vmem:[%s1164_s1 + $0x68] sm:$0xff] }
  0xcf   :  { %v212_v24 = vrot.slane %v190_v21, %v979_v15  ;;  %v141_v27 = vcombine.high %v133_v23, %v133_v23  ;;  %v149_v28 = vrot.slane %v133_v23, %v979_v15  ;;  %v259_v30 = vrot.slane %v198_v22, %v982_v19  ;;  %v30_v23 = vld [vmem:[%s1164_s1 + $0x28] sm:$0xff] }
  0xd0   :  { %v220_v31 = vcombine.high %v198_v22, %v198_v22  ;;  %v140_v36 = vrot.slane %v126_v25, %v979_v15  ;;  %v205_v40 = vrot.slane %v189_v26, %v979_v15  ;;  %v191_v52 = vcombine.high %v189_v26, %v189_v26 }
  0xd1   :  { %v263_v32 = vrot.slane %v212_v24, %v982_v19  ;;  %v163_v33 = vrot.slane %v141_v27, %v979_v15  ;;  %v171_v37 = vcombine.high %v149_v28, %v149_v28  ;;  %v312_v38 = vmul.f32 %v259_v30, %v33_v29 }
  0xd2   :  { %v227_v39 = vrot.slane %v149_v28, %v982_v19  ;;  %v267_v46 = vrot.slane %v220_v31, %v982_v19  ;;  %v156_v48 = vrot.slane %v140_v36, %v979_v15  ;;  %v275_v56 = vrot.slane %v205_v40, %v982_v19  ;;  %v39_v28 = vld [vmem:[%s1164_s1 + $0x70] sm:$0xff] }
  0xd3   :  { %v231_v42 = vrot.slane %v163_v33, %v982_v19  ;;  %v344_v43 = vsel %vm42_vm0, %v312_v38, 0.0  ;;  %v313_v45 = vmul.f32 %v263_v32, %v34_v35  ;;  %v235_v51 = vrot.slane %v171_v37, %v982_v19  ;;  %v40_v37 = vld [vmem:[%s1164_s1 + $0x78] sm:$0xff] }
  0xd4   :  { %v304_v44 = vmul.f32 %v227_v39, %v25_v34  ;;  %345 = vadd.xlane.f32.xlu1 %v344_v43  ;;  %v314_v55 = vmul.f32 %v267_v46, %v35_v47  ;;  %v222_v57 = vcombine.high %v212_v24, %v212_v24  ;;  %v142_v58 = vcombine.high %v140_v36, %v140_v36 }
  0xd5   :  { %v305_v50 = vmul.f32 %v231_v42, %v26_v41  ;;  %v347_v54 = vsel %vm42_vm0, %v313_v45, 0.0  ;;  %v306_v61 = vmul.f32 %v235_v51, %v27_v53  ;;  %v243_v62 = vrot.slane %v156_v48, %v982_v19  ;;  %v32_v41 = vld [vmem:[%s1164_s1 + $0x38] sm:$0xff] }
  0xd6   :  { %v320_v49 = vsel %vm42_vm0, %v304_v44, 0.0  ;;  %v173_v63 = vcombine.high %v163_v33, %v163_v33  ;;  %v350_v1 = vsel %vm42_vm0, %v314_v55, 0.0  ;;  %v316_v2 = vmul.f32 %v275_v56, %v37_v59  ;;  %v31_v33 = vld [vmem:[%s1164_s1 + $0x30] sm:$0xff]  ;;  %s929_s1 = smov [#allocation3]  }
  0xd7   :  { %321 = vadd.xlane.f32.xlu0 %v320_v49  ;;  %v323_v60 = vsel %vm42_vm0, %v305_v50, 0.0  ;;  %v271_v3 = vrot.slane %v222_v57, %v982_v19  ;;  %v219_v4 = vrot.slane %v191_v52, %v979_v15  ;;  %v326_v6 = vsel %vm42_vm0, %v306_v61, 0.0 }
  0xd8   :  { %348 = vadd.xlane.f32.xlu1 %v347_v54  ;;  %v308_v7 = vmul.f32 %v243_v62, %v29_v0  ;;  %v239_v8 = vrot.slane %v173_v63, %v982_v19  ;;  %v170_v10 = vrot.slane %v142_v58, %v979_v15  ;;  %v356_v13 = vsel %vm42_vm0, %v316_v2, 0.0 }
  0xd9   :  { %v315_v14 = vmul.f32 %v271_v3, %v36_v5  ;;  %v279_v16 = vrot.slane %v219_v4, %v982_v19  ;;  %v221_v17 = vcombine.high %v205_v40, %v205_v40  ;;  %v172_v22 = vcombine.high %v156_v48, %v156_v48 }
  0xda   :  { %v332_v20 = vsel %vm42_vm0, %v308_v7, 0.0  ;;  %v307_v21 = vmul.f32 %v239_v8, %v28_v12  ;;  %v247_v15 = vrot.slane %v170_v10, %v982_v19  ;;  %v223_v27 = vcombine.high %v219_v4, %v219_v4 }
  0xdb   :  { %324 = vadd.xlane.f32.xlu0 %v323_v60  ;;  %v353_v24 = vsel %vm42_vm0, %v315_v14, 0.0  ;;  %v317_v25 = vmul.f32 %v279_v16, %v38_v18  ;;  %v283_v26 = vrot.slane %v221_v17, %v982_v19  ;;  %v251_v31 = vrot.slane %v172_v22, %v982_v19 }
  0xdc   :  { %351 = vadd.xlane.f32.xlu1 %v350_v1  ;;  %v329_v29 = vsel %vm42_vm0, %v307_v21, 0.0  ;;  %v309_v30 = vmul.f32 %v247_v15, %v30_v23  ;;  %v174_v32 = vcombine.high %v170_v10, %v170_v10  ;;  %v287_v36 = vrot.slane %v223_v27, %v982_v19 }
  0xdd   :  { %v359_v34 = vsel %vm42_vm0, %v317_v25, 0.0  ;;  %v318_v35 = vmul.f32 %v283_v26, %v39_v28  ;;  %v310_v39 = vmul.f32 %v251_v31, %v31_v33 }
  0xde   :  { %v335_v38 = vsel %vm42_vm0, %v309_v30, 0.0  ;;  %v255_v40 = vrot.slane %v174_v32, %v982_v19  ;;  %v319_v43 = vmul.f32 %v287_v36, %v40_v37  ;;  %v1078_v19 = vstv %s1166_s3  ;;  %s757_s3 = sshll.u32 %s929_s1, 4  ;;  %s758_s3 = int_to_ptr.vmem [resolvable:$true] %s757_s3 }
  0xdf   :  { %327 = vadd.xlane.f32.xlu0 %v326_v6  ;;  %v362_v42 = vsel %vm42_vm0, %v318_v35, 0.0  ;;  %v338_v44 = vsel %vm42_vm0, %v310_v39, 0.0  ;;  %s906_s5 = scalar_lea.vmem %s758_s3, 16  ;;  %s910_s6 = scalar_lea.vmem %s758_s3, 32 }
  0xe0   :  { %357 = vadd.xlane.f32.xlu1 %v356_v13  ;;  %v311_v45 = vmul.f32 %v255_v40, %v32_v41  ;;  %v365_v46 = vsel %vm42_vm0, %v319_v43, 0.0  ;;  %p907_p0 = scmp.ne.s32.totalorder %s758_s3, %s906_s5  ;;  %p911_p1 = scmp.lt.s32.totalorder %s758_s3, %s758_s3 }
  0xe1   :  { %p912_p2 = scmp.lt.s32.totalorder %s910_s6, %s906_s5 }
  0xe2   :  { %v341_v47 = vsel %vm42_vm0, %v311_v45, 0.0 }
  0xe3   :  { %333 = vadd.xlane.f32.xlu0 %v332_v20  ;;  %p913_p3 = por %p912_p2, %p911_p1 }
  0xe4   :  { %354 = vadd.xlane.f32.xlu1 %v353_v24 }
  0xe5   :  { %p914_p4 = pnand %p913_p3, %p907_p0 }
  0xe7   :  { %330 = vadd.xlane.f32.xlu0 %v329_v29 }
  0xe8   :  { %360 = vadd.xlane.f32.xlu1 %v359_v34 }
  0xeb   :  { %336 = vadd.xlane.f32.xlu0 %v335_v38 }
  0xec   :  { %363 = vadd.xlane.f32.xlu1 %v362_v42 }
  0xef   :  { %339 = vadd.xlane.f32.xlu0 %v338_v44 }
  0xf0   :  { %366 = vadd.xlane.f32.xlu1 %v365_v46 }
  0xf3   :  { %342 = vadd.xlane.f32.xlu0 %v341_v47 }
 0x15d   :  { %v346_v48 = vpop.xlane.xlu1 %345 }
 0x15e   :  { %v377_v49 = vadd.f32 %v1078_v19, %v346_v48 }
 0x160   :  { %v322_v50 = vpop.xlane.xlu0 %321  ;;  %v775_v51 = vmul.f32 -1.442695, %v377_v49 }
 0x161   :  { %v369_v52 = vadd.f32 %v1078_v19, %v322_v50  ;;  %v349_v53 = vpop.xlane.xlu1 %348 }
 0x162   :  { %802 = vpow2.f32 %v775_v51  ;;  %v378_v55 = vadd.f32 %v1078_v19, %v349_v53 }
 0x163   :  { %v767_v54 = vmul.f32 -1.442695, %v369_v52 }
 0x164   :  { %v325_v56 = vpop.xlane.xlu0 %324  ;;  %v776_v57 = vmul.f32 -1.442695, %v378_v55 }
 0x165   :  { %804 = vpow2.f32 %v767_v54  ;;  %v370_v58 = vadd.f32 %v1078_v19, %v325_v56  ;;  %v352_v59 = vpop.xlane.xlu1 %351 }
 0x166   :  { %806 = vpow2.f32 %v776_v57  ;;  %v379_v61 = vadd.f32 %v1078_v19, %v352_v59 }
 0x167   :  { %v768_v60 = vmul.f32 -1.442695, %v370_v58 }
 0x168   :  { %v328_v62 = vpop.xlane.xlu0 %327  ;;  %v777_v63 = vmul.f32 -1.442695, %v379_v61 }
 0x169   :  { %808 = vpow2.f32 %v768_v60  ;;  %v371_v0 = vadd.f32 %v1078_v19, %v328_v62  ;;  %v358_v1 = vpop.xlane.xlu1 %357 }
 0x16a   :  { %810 = vpow2.f32 %v777_v63  ;;  %v381_v3 = vadd.f32 %v1078_v19, %v358_v1 }
 0x16b   :  { %v769_v2 = vmul.f32 -1.442695, %v371_v0 }
 0x16c   :  { %v334_v4 = vpop.xlane.xlu0 %333  ;;  %v779_v5 = vmul.f32 -1.442695, %v381_v3 }
 0x16d   :  { %812 = vpow2.f32 %v769_v2  ;;  %v373_v6 = vadd.f32 %v1078_v19, %v334_v4  ;;  %v355_v7 = vpop.xlane.xlu1 %354 }
 0x16e   :  { %814 = vpow2.f32 %v779_v5  ;;  %v380_v10 = vadd.f32 %v1078_v19, %v355_v7 }
 0x16f   :  { %v771_v8 = vmul.f32 -1.442695, %v373_v6  ;;  %v803_v12 = vpop.eup %802 }
 0x170   :  { %v331_v13 = vpop.xlane.xlu0 %330  ;;  %v441_v14 = vadd.f32 1.0, %v803_v12  ;;  %v778_v16 = vmul.f32 -1.442695, %v380_v10 }
 0x171   :  { %816 = vpow2.f32 %v771_v8  ;;  %v372_v17 = vadd.f32 %v1078_v19, %v331_v13  ;;  %v361_v20 = vpop.xlane.xlu1 %360 }
 0x172   :  { %v805_v18 = vpop.eup %804  ;;  %v382_v22 = vadd.f32 %v1078_v19, %v361_v20  ;;  %818 = vpow2.f32 %v778_v16 }
 0x173   :  { %v433_v21 = vadd.f32 1.0, %v805_v18  ;;  %v770_v15 = vmul.f32 -1.442695, %v372_v17  ;;  %v807_v23 = vpop.eup %806  ;;  %820 = vrcp.f32 %v441_v14 }
 0x174   :  { %v337_v24 = vpop.xlane.xlu0 %336  ;;  %v442_v25 = vadd.f32 1.0, %v807_v23  ;;  %v780_v26 = vmul.f32 -1.442695, %v382_v22 }
 0x175   :  { %v374_v27 = vadd.f32 %v1078_v19, %v337_v24  ;;  %822 = vpow2.f32 %v770_v15  ;;  %v364_v29 = vpop.xlane.xlu1 %363 }
 0x176   :  { %v809_v28 = vpop.eup %808  ;;  %824 = vrcp.f32 %v433_v21  ;;  %v383_v32 = vadd.f32 %v1078_v19, %v364_v29 }
 0x177   :  { %v434_v30 = vadd.f32 1.0, %v809_v28  ;;  %v772_v31 = vmul.f32 -1.442695, %v374_v27  ;;  %v811_v33 = vpop.eup %810  ;;  %826 = vpow2.f32 %v780_v26 }
 0x178   :  { %v340_v34 = vpop.xlane.xlu0 %339  ;;  %828 = vrcp.f32 %v442_v25  ;;  %v443_v35 = vadd.f32 1.0, %v811_v33  ;;  %v781_v36 = vmul.f32 -1.442695, %v383_v32 }
 0x179   :  { %v375_v37 = vadd.f32 %v1078_v19, %v340_v34  ;;  %830 = vpow2.f32 %v772_v31  ;;  %v367_v39 = vpop.xlane.xlu1 %366 }
 0x17a   :  { %v813_v38 = vpop.eup %812  ;;  %832 = vrcp.f32 %v434_v30  ;;  %v384_v42 = vadd.f32 %v1078_v19, %v367_v39 }
 0x17b   :  { %v435_v40 = vadd.f32 1.0, %v813_v38  ;;  %v773_v41 = vmul.f32 -1.442695, %v375_v37  ;;  %v815_v43 = vpop.eup %814  ;;  %834 = vpow2.f32 %v781_v36 }
 0x17c   :  { %v343_v44 = vpop.xlane.xlu0 %342  ;;  %836 = vrcp.f32 %v443_v35  ;;  %v445_v45 = vadd.f32 1.0, %v815_v43  ;;  %v782_v46 = vmul.f32 -1.442695, %v384_v42 }
 0x17d   :  { %v376_v47 = vadd.f32 %v1078_v19, %v343_v44  ;;  %838 = vpow2.f32 %v773_v41 }
 0x17e   :  { %v817_v48 = vpop.eup %816  ;;  %840 = vrcp.f32 %v435_v40 }
 0x17f   :  { %v437_v49 = vadd.f32 1.0, %v817_v48  ;;  %v774_v50 = vmul.f32 -1.442695, %v376_v47  ;;  %842 = vpow2.f32 %v782_v46  ;;  %v819_v51 = vpop.eup %818 }
 0x180   :  { %844 = vrcp.f32 %v445_v45  ;;  %v821_v52 = vpop.eup %820  ;;  %v444_v53 = vadd.f32 1.0, %v819_v51 }
 0x181   :  { %846 = vpow2.f32 %v774_v50  ;;  %v489_v63 = vmul.f32 2.0, %v821_v52 }
 0x182   :  { %v823_v54 = vpop.eup %822  ;;  %848 = vrcp.f32 %v437_v49 }
 0x183   :  { %v825_v55 = vpop.eup %824  ;;  %850 = vrcp.f32 %v444_v53  ;;  %v436_v56 = vadd.f32 1.0, %v823_v54  ;;  %v513_v8 = vmul.f32 1.442695, %v489_v63 }
 0x184   :  { %v827_v57 = vpop.eup %826  ;;  %v481_v3 = vmul.f32 2.0, %v825_v55 }
 0x185   :  { %v829_v58 = vpop.eup %828  ;;  %852 = vrcp.f32 %v436_v56  ;;  %v446_v19 = vadd.f32 1.0, %v827_v57 }
 0x186   :  { %v831_v59 = vpop.eup %830  ;;  %v490_v5 = vmul.f32 2.0, %v829_v58  ;;  %v497_v17 = vmul.f32 1.442695, %v481_v3 }
 0x187   :  { %v833_v60 = vpop.eup %832  ;;  %854 = vrcp.f32 %v446_v19  ;;  %v438_v61 = vadd.f32 1.0, %v831_v59 }
 0x188   :  { %v835_v62 = vpop.eup %834  ;;  %v482_v10 = vmul.f32 2.0, %v833_v60  ;;  %v515_v20 = vmul.f32 1.442695, %v490_v5 }
 0x189   :  { %v837_v0 = vpop.eup %836  ;;  %856 = vrcp.f32 %v438_v61  ;;  %v447_v1 = vadd.f32 1.0, %v835_v62 }
 0x18a   :  { %v839_v2 = vpop.eup %838  ;;  %v491_v13 = vmul.f32 2.0, %v837_v0  ;;  %v499_v23 = vmul.f32 1.442695, %v482_v10 }
 0x18b   :  { %v841_v4 = vpop.eup %840  ;;  %858 = vrcp.f32 %v447_v1  ;;  %v439_v6 = vadd.f32 1.0, %v839_v2 }
 0x18c   :  { %v843_v7 = vpop.eup %842  ;;  %v483_v21 = vmul.f32 2.0, %v841_v4  ;;  %v517_v25 = vmul.f32 1.442695, %v491_v13 }
 0x18d   :  { %v845_v12 = vpop.eup %844  ;;  %860 = vrcp.f32 %v439_v6  ;;  %v448_v14 = vadd.f32 1.0, %v843_v7 }
 0x18e   :  { %v847_v16 = vpop.eup %846  ;;  %v493_v24 = vmul.f32 2.0, %v845_v12  ;;  %v501_v29 = vmul.f32 1.442695, %v483_v21 }
 0x18f   :  { %v849_v18 = vpop.eup %848  ;;  %862 = vrcp.f32 %v448_v14  ;;  %v440_v15 = vadd.f32 1.0, %v847_v16 }
 0x190   :  { %v851_v22 = vpop.eup %850  ;;  %864 = vpow2.f32 %v513_v8  ;;  %v485_v28 = vmul.f32 2.0, %v849_v18  ;;  %v521_v33 = vmul.f32 1.442695, %v493_v24 }
 0x191   :  { %v492_v26 = vmul.f32 2.0, %v851_v22  ;;  %866 = vrcp.f32 %v440_v15 }
 0x192   :  { %v853_v27 = vpop.eup %852  ;;  %868 = vpow2.f32 %v497_v17  ;;  %v505_v37 = vmul.f32 1.442695, %v485_v28 }
 0x193   :  { %870 = vpow2.f32 %v515_v20  ;;  %v519_v30 = vmul.f32 1.442695, %v492_v26  ;;  %v484_v31 = vmul.f32 2.0, %v853_v27 }
 0x194   :  { %v855_v32 = vpop.eup %854  ;;  %872 = vpow2.f32 %v499_v23 }
 0x195   :  { %874 = vpow2.f32 %v517_v25  ;;  %v503_v34 = vmul.f32 1.442695, %v484_v31  ;;  %v494_v35 = vmul.f32 2.0, %v855_v32 }
 0x196   :  { %v857_v36 = vpop.eup %856  ;;  %876 = vpow2.f32 %v519_v30 }
 0x197   :  { %878 = vpow2.f32 %v501_v29  ;;  %v523_v38 = vmul.f32 1.442695, %v494_v35  ;;  %v486_v39 = vmul.f32 2.0, %v857_v36 }
 0x198   :  { %v859_v40 = vpop.eup %858  ;;  %880 = vpow2.f32 %v521_v33 }
 0x199   :  { %882 = vpow2.f32 %v503_v34  ;;  %v507_v41 = vmul.f32 1.442695, %v486_v39  ;;  %v495_v42 = vmul.f32 2.0, %v859_v40 }
 0x19a   :  { %v861_v43 = vpop.eup %860  ;;  %884 = vpow2.f32 %v505_v37 }
 0x19b   :  { %886 = vpow2.f32 %v523_v38  ;;  %v525_v44 = vmul.f32 1.442695, %v495_v42  ;;  %v487_v45 = vmul.f32 2.0, %v861_v43 }
 0x19c   :  { %v863_v46 = vpop.eup %862  ;;  %888 = vpow2.f32 %v507_v41 }
 0x19d   :  { %v865_v47 = vpop.eup %864  ;;  %890 = vpow2.f32 %v525_v44  ;;  %v509_v48 = vmul.f32 1.442695, %v487_v45  ;;  %v496_v49 = vmul.f32 2.0, %v863_v46 }
 0x19e   :  { %v867_v50 = vpop.eup %866  ;;  %v582_v2 = vrot.slane %v865_v47, %v975_v9  ;;  %v677_v4 = vrot.slane %v865_v47, %v977_v11 }
 0x19f   :  { %v869_v51 = vpop.eup %868  ;;  %892 = vpow2.f32 %v509_v48  ;;  %v527_v52 = vmul.f32 1.442695, %v496_v49  ;;  %v488_v53 = vmul.f32 2.0, %v867_v50 }
 0x1a0   :  { %v871_v54 = vpop.eup %870  ;;  %v550_v7 = vrot.slane %v869_v51, %v975_v9  ;;  %v645_v12 = vrot.slane %v869_v51, %v977_v11 }
 0x1a1   :  { %v873_v55 = vpop.eup %872  ;;  %894 = vpow2.f32 %v527_v52  ;;  %v511_v56 = vmul.f32 1.442695, %v488_v53  ;;  %v586_v59 = vrot.slane %v871_v54, %v975_v9  ;;  %v681_v60 = vrot.slane %v871_v54, %v977_v11 }
 0x1a2   :  { %v875_v57 = vpop.eup %874  ;;  %v554_v63 = vrot.slane %v873_v55, %v975_v9  ;;  %v649_v0 = vrot.slane %v873_v55, %v977_v11 }
 0x1a3   :  { %v877_v58 = vpop.eup %876  ;;  %896 = vpow2.f32 %v511_v56  ;;  %v590_v62 = vrot.slane %v875_v57, %v975_v9  ;;  %v685_v5 = vrot.slane %v875_v57, %v977_v11  ;;  %v625_v14 = vsel %vm611_vm1, %v586_v59, %v582_v2 }
 0x1a4   :  { %v879_v19 = vpop.eup %878  ;;  %v594_v3 = vrot.slane %v877_v58, %v975_v9  ;;  %v689_v10 = vrot.slane %v877_v58, %v977_v11  ;;  %v713_v16 = vsel %vm611_vm1, %v681_v60, %v677_v4  ;;  %v612_v15 = vsel %vm611_vm1, %v554_v63, %v550_v7 }
 0x1a5   :  { %v881_v61 = vpop.eup %880  ;;  %v558_v8 = vrot.slane %v879_v19, %v975_v9  ;;  %v653_v17 = vrot.slane %v879_v19, %v977_v11  ;;  %v626_v20 = vsel %vm613_vm2, %v590_v62, %v625_v14  ;;  %v706_v22 = vsel %vm611_vm1, %v649_v0, %v645_v12 }
 0x1a6   :  { %v883_v1 = vpop.eup %882  ;;  %v598_v24 = vrot.slane %v881_v61, %v975_v9  ;;  %v627_v25 = vsel %vm615_vm3, %v594_v3, %v626_v20  ;;  %v714_v26 = vsel %vm613_vm2, %v685_v5, %v713_v16  ;;  %v693_v30 = vrot.slane %v881_v61, %v977_v11 }
 0x1a7   :  { %v885_v6 = vpop.eup %884  ;;  %v562_v21 = vrot.slane %v883_v1, %v975_v9  ;;  %v657_v27 = vrot.slane %v883_v1, %v977_v11  ;;  %v614_v29 = vsel %vm613_vm2, %v558_v8, %v612_v15  ;;  %v715_v31 = vsel %vm615_vm3, %v689_v10, %v714_v26 }
 0x1a8   :  { %v887_v13 = vpop.eup %886  ;;  %v566_v34 = vrot.slane %v885_v6, %v975_v9  ;;  %v707_v36 = vsel %vm613_vm2, %v653_v17, %v706_v22  ;;  %v628_v37 = vsel %vm617_vm4, %v598_v24, %v627_v25  ;;  %v661_v40 = vrot.slane %v885_v6, %v977_v11 }
 0x1a9   :  { %v889_v18 = vpop.eup %888  ;;  %v602_v28 = vrot.slane %v887_v13, %v975_v9  ;;  %v697_v35 = vrot.slane %v887_v13, %v977_v11  ;;  %v616_v39 = vsel %vm615_vm3, %v562_v21, %v614_v29  ;;  %v716_v44 = vsel %vm617_vm4, %v693_v30, %v715_v31 }
 0x1aa   :  { %v891_v23 = vpop.eup %890  ;;  %v570_v38 = vrot.slane %v889_v18, %v975_v9  ;;  %v708_v45 = vsel %vm615_vm3, %v657_v27, %v707_v36  ;;  %v665_v49 = vrot.slane %v889_v18, %v977_v11  ;;  %v618_v52 = vsel %vm617_vm4, %v566_v34, %v616_v39 }
 0x1ab   :  { %v606_v33 = vrot.slane %v891_v23, %v975_v9  ;;  %v701_v43 = vrot.slane %v891_v23, %v977_v11  ;;  %v629_v47 = vsel %vm619_vm5, %v602_v28, %v628_v37  ;;  %v717_v53 = vsel %vm619_vm5, %v697_v35, %v716_v44 }
 0x1ac   :  { %v893_v32 = vpop.eup %892  ;;  %v620_v57 = vsel %vm619_vm5, %v570_v38, %v618_v52  ;;  %v709_v61 = vsel %vm617_vm4, %v661_v40, %v708_v45 }
 0x1ad   :  { %v574_v42 = vrot.slane %v893_v32, %v975_v9  ;;  %v630_v51 = vsel %vm621_vm6, %v606_v33, %v629_v47  ;;  %v669_v54 = vrot.slane %v893_v32, %v977_v11  ;;  %v718_v60 = vsel %vm621_vm6, %v701_v43, %v717_v53 }
 0x1ae   :  { %v895_v41 = vpop.eup %894  ;;  %v710_v0 = vsel %vm619_vm5, %v665_v49, %v709_v61 }
 0x1af   :  { %v610_v46 = vrot.slane %v895_v41, %v975_v9  ;;  %v705_v48 = vrot.slane %v895_v41, %v977_v11  ;;  %v622_v59 = vsel %vm621_vm6, %v574_v42, %v620_v57  ;;  %v711_v1 = vsel %vm621_vm6, %v669_v54, %v710_v0 }
 0x1b0   :  { %v897_v50 = vpop.eup %896 }
 0x1b1   :  { %v631_v55 = vsel %vm623_vm7, %v610_v46, %v630_v51  ;;  %v578_v56 = vrot.slane %v897_v50, %v975_v9  ;;  %v673_v58 = vrot.slane %v897_v50, %v977_v11  ;;  %v719_v63 = vsel %vm623_vm7, %v705_v48, %v718_v60 }
 0x1b2   :  { %v638_v19 = vsel %vm634_vm8, %v631_v55, 0.0  ;;  %v725_v2 = vsel %vm634_vm8, %v719_v63, 0.0 }
 0x1b3   :  { %639 = vadd.xlane.f32.xlu1 %v638_v19  ;;  %v624_v62 = vsel %vm623_vm7, %v578_v56, %v622_v59  ;;  %v712_v11 = vsel %vm623_vm7, %v673_v58, %v711_v1 }
 0x1b4   :  { %v635_v9 = vsel %vm634_vm8, %v624_v62, 0.0  ;;  %v722_v3 = vsel %vm634_vm8, %v712_v11, 0.0 }
 0x1b5   :  { %636 = vadd.xlane.f32.xlu0 %v635_v9 }
 0x1b7   :  { %726 = vadd.xlane.f32.xlu1 %v725_v2 }
 0x1b9   :  { %723 = vadd.xlane.f32.xlu0 %v722_v3 }
 0x23c   :  { %v640_v4 = vpop.xlane.xlu1 %639 }
 0x23e   :  { %v637_v5 = vpop.xlane.xlu0 %636 }
 0x240   :  { %v727_v6 = vpop.xlane.xlu1 %726 }
 0x241   :  { %v729_v7 = vadd.f32 %v727_v6, %v640_v4 }
 0x242   :  { %v724_v8 = vpop.xlane.xlu0 %723 }
 0x243   :  { %898 = vrcp.f32 %v729_v7  ;;  %v728_v10 = vadd.f32 %v724_v8, %v637_v5 }
 0x245   :  { %900 = vrcp.f32 %v728_v10 }
 0x250   :  { %v899_v12 = vpop.eup %898 }
 0x251   :  { %v733_v13 = vmul.f32 %v899_v12, %v640_v4 }
 0x252   :  { %v901_v14 = vpop.eup %900 }
 0x253   :  { %v735_v16 = vmin.f32 %v733_v13, 0.9  ;;  %v731_v17 = vmul.f32 %v901_v14, %v637_v5 }
 0x255   :  { %v734_v18 = vmin.f32 %v731_v17, 0.9  ;;  %902 = vlog2.f32 %v735_v16 }
 0x257   :  { %904 = vlog2.f32 %v734_v18 }
 0x262   :  { %v903_v20 = vpop.eup %902 }
 0x263   :  { %v739_v21 = vmul.f32 0.6931472, %v903_v20 }
 0x264   :  { %v905_v15 = vpop.eup %904 }
 0x265   :  { %v737_v22 = vmul.f32 0.6931472, %v905_v15  ;;  %v741_v24 = vsub.f32 0.0, %v739_v21 }
 0x267   :  { %v740_v23 = vsub.f32 0.0, %v737_v22 }
 0x269   :  { %v742_v25 = vadd.f32 %v741_v24, %v740_v23 }
 0x26b   :  { %v743_v26 = vrot.slane %v742_v25, 4 }
 0x26d   :  { %v744_v27 = vadd.f32 %v743_v26, %v742_v25 }
 0x26f   :  { %v745_v28 = vrot.slane %v744_v27, 2 }
 0x271   :  { %v746_v29 = vadd.f32 %v745_v28, %v744_v27 }
 0x273   :  { %v747_v30 = vrot.slane %v746_v29, 1 }
 0x275   :  { %v748_v31 = vadd.f32 %v747_v30, %v746_v29 }
 0x277   :  { %750 = vst.msk [vmem:[#allocation3] sm:$0x1] %vm749_vm9, %v748_v31 }
 0x278   :  { %917 = shalt.err (!%p914_p4)
}
 0x279   :  { %760 = dma.vmem_to_hbm [thread:$0]  %s758_s3, 16, %s1167_s4, [#allocation4]  }
 0x27a   :  { %926 = dma.done.wait [#allocation4], 16  }
 0x27b   :  { %927 = vsyncadd [#allocation4], 4294967280 }
 0x27c   :  { %764 = vsyncpa [#allocation4], 1 }

// kernel: milnce_forward.3
= control target key start
LH: loop header
LB: loop body
LE: loop exit
PB: predicated region body
PF: predicated region fallthrough
CT: control target
= control target key end

     0   :  { %vm58_vm0 = vcmask 261120   ;;  %s1869_s0 = inlined_call_operand.vmem [shape: f32[16,32], index: 0, kind: input, shape index: {}]   ;;  %s1870_s1 = inlined_call_operand.vmem [shape: f32[16,12,32], index: 1, kind: input, shape index: {}]   ;;  %s1871_s2 = inlined_call_operand.vmem [shape: f32[32,32], index: 2, kind: input, shape index: {}]   ;;  %s1872_s3 = inlined_call_operand.<no memory space> [shape: f32[1], index: 3, kind: input, shape index: {}]   ;;  %s1873_s4 = inlined_call_operand.hbm [shape: f32[1,1], index: 4, kind: output, shape index: {}]  }
   0x1   :  { %v24_v0 = vld [vmem:[%s1871_s2 + $0x18] sm:$0xff]  ;;  %v23_v1 = vld [vmem:[%s1871_s2 + $0x10] sm:$0xff]  ;;  %v19_v2 = vld [vmem:[%s1869_s0] sm:$0xff] }
   0x2   :  { %1164 = vmatprep.subr.mxu0 %v24_v0  ;;  %v22_v3 = vld [vmem:[%s1871_s2 + $0x8] sm:$0xff]  ;;  %1172 = vmatprep.mubr.msk.f32.mxu0 %vm58_vm0, %v19_v2 }
   0x3   :  { %1165 = vmatpush3.msra.mxu0 %v24_v0 }
   0x4   :  { %10 = vsyncpa [#allocation4], 0  ;;  %1166 = vmatprep.subr.mxu0 %v23_v1  ;;  %v21_v4 = vld [vmem:[%s1871_s2] sm:$0xff]  ;;  %v20_v5 = vld [vmem:[%s1869_s0 + $0x8] sm:$0xff]  ;;  %v146_v6 = vlaneseq  ;;  %v1407_v12 = vmov 1966171168  }
   0x5   :  { %1167 = vmatpush3.msra.mxu0 %v23_v1  ;;  %v144_v13 = vunpack.c.l.s4 %v1407_v12  ;;  %v42_v28 = vld [vmem:[%s1870_s1 + $0x88] sm:$0xf]  ;;  %v41_v30 = vld [vmem:[%s1870_s1 + $0x80] sm:$0xff]  ;;  %vm355_vm1 = vcmask 257024   ;;  %v44_v32 = vld [vmem:[%s1870_s1 + $0x98] sm:$0xf] }
   0x6   :  { %1168 = vmatprep.subr.mxu0 %v22_v3  ;;  %v147_v7 = vshrl.u32 %v146_v6, 7  ;;  %v787_v8 = vand.u32 127, %v146_v6  ;;  %v25_v33 = vld [vmem:[%s1870_s1] sm:$0xff]  ;;  %v46_v44 = vld [vmem:[%s1870_s1 + $0xa8] sm:$0xf]  ;;  %v43_v53 = vld [vmem:[%s1870_s1 + $0x90] sm:$0xff] }
   0x7   :  { %1169 = vmatpush3.msra.mxu0 %v22_v3  ;;  %v145_v14 = vunpack.c.0.s8 %v144_v13  ;;  %v26_v45 = vld [vmem:[%s1870_s1 + $0x8] sm:$0xf]  ;;  %v45_v58 = vld [vmem:[%s1870_s1 + $0xa0] sm:$0xff]  ;;  %v27_v60 = vld [vmem:[%s1870_s1 + $0x10] sm:$0xff]  ;;  %vm852_vm2 = vcmask 1041409   ;;  %vm854_vm3 = vcmask 1042434  }
   0x8   :  { %1170 = vmatprep.subr.mxu0 %v21_v4  ;;  %v1454_v9 = vsub.s32 %v787_v8, %v147_v7  ;;  %v882_v10 = vadd.s32 4, %v787_v8  ;;  %v1461_v19 = vsub.s32 0, %v147_v7  ;;  %v50_v52 = vld [vmem:[%s1870_s1 + $0xc8] sm:$0xf]  ;;  %v49_v3 = vld [vmem:[%s1870_s1 + $0xc0] sm:$0xff]  ;;  %vm856_vm4 = vcmask 1043459  }
   0x9   :  { %1171 = vmatpush3.msra.mxu0 %v21_v4  ;;  %v1458_v15 = vsub.s32 %v145_v14, %v147_v7  ;;  %v28_v4 = vld [vmem:[%s1870_s1 + $0x18] sm:$0xf]  ;;  %v29_v14 = vld [vmem:[%s1870_s1 + $0x20] sm:$0xff]  ;;  %vm858_vm5 = vcmask 1044484   ;;  %vm860_vm6 = vcmask 1045509   ;;  %vm864_vm7 = vcmask 1047559  }
   0xa   :  { %1173 = vmatmul.mubr.msk.f32.vlgmr.msra.gmra.mxu0 %vm58_vm0, %v20_v5  ;;  %v1456_v11 = vsub.s32 %v882_v10, %v147_v7  ;;  %vm862_vm8 = vcmask 1046534   ;;  %vm875_vm9 = vcmask 31744   ;;  %vm1108_vm10 = vcmask 0  }
  0xca   :  { %v1174_v16 = vpop.f32.mrf.mxu0 }
  0xcb   :  { %v198_v17 = vrot.slane %v1174_v16, %v1458_v15  ;;  %v191_v18 = vcombine.high %v1174_v16, %v1174_v16  ;;  %v30_v16 = vld [vmem:[%s1870_s1 + $0x28] sm:$0xf] }
  0xcc   :  { %v131_v20 = vpop.f32.mrf.mxu0 }
  0xcd   :  { %v206_v21 = vcombine.high %v198_v17, %v198_v17  ;;  %v214_v22 = vrot.slane %v198_v17, %v1458_v15  ;;  %v149_v23 = vrot.slane %v131_v20, %v1458_v15  ;;  %v1469_v25 = vrot.slane %v191_v18, %v1458_v15 }
  0xce   :  { %v142_v61 = vcombine.high %v131_v20, %v131_v20 }
  0xcf   :  { %v1466_v24 = vrot.slane %v206_v21, %v1458_v15  ;;  %v236_v26 = vcombine.high %v214_v22, %v214_v22  ;;  %v165_v27 = vrot.slane %v149_v23, %v1458_v15  ;;  %v275_v29 = vrot.slane %v214_v22, %v1461_v19 }
  0xd0   :  { %v1490_v37 = vrot.slane %v1469_v25, %v1458_v15  ;;  %v157_v38 = vcombine.high %v149_v23, %v149_v23  ;;  %v156_v5 = vrot.slane %v142_v61, %v1458_v15  ;;  %v207_v17 = vcombine.high %v1469_v25, %v1469_v25  ;;  %v48_v25 = vld [vmem:[%s1870_s1 + $0xb8] sm:$0xf] }
  0xd1   :  { %v279_v31 = vrot.slane %v1466_v24, %v1461_v19  ;;  %v337_v34 = vmul.f32 %v275_v29, %v42_v28  ;;  %v336_v35 = vmul.f32 %v275_v29, %v41_v30  ;;  %v243_v36 = vrot.slane %v165_v27, %v1461_v19 }
  0xd2   :  { %v283_v39 = vrot.slane %v236_v26, %v1461_v19  ;;  %v1502_v46 = vrot.slane %v157_v38, %v1458_v15  ;;  %v291_v47 = vrot.slane %v1490_v37, %v1461_v19  ;;  %v187_v63 = vcombine.high %v165_v27, %v165_v27  ;;  %v47_v26 = vld [vmem:[%s1870_s1 + $0xb0] sm:$0xff] }
  0xd3   :  { %v404_v40 = vsel %vm355_vm1, %v337_v34, 0.0  ;;  %v401_v41 = vsel %vm58_vm0, %v336_v35, 0.0  ;;  %v339_v42 = vmul.f32 %v279_v31, %v44_v32  ;;  %v320_v43 = vmul.f32 %v243_v36, %v25_v33  ;;  %v34_v32 = vld [vmem:[%s1870_s1 + $0x48] sm:$0xf]  ;;  %v33_v34 = vld [vmem:[%s1870_s1 + $0x40] sm:$0xff] }
  0xd4   :  { %405 = vadd.xlane.f32.xlu1 %v404_v40  ;;  %402 = vadd.xlane.f32.xlu0 %v401_v41  ;;  %v341_v50 = vmul.f32 %v283_v39, %v46_v44  ;;  %v321_v51 = vmul.f32 %v243_v36, %v26_v45  ;;  %v345_v54 = vmul.f32 %v291_v47, %v50_v52  ;;  %v53_v52 = vld [vmem:[%s1870_s1 + $0xe0] sm:$0xff] }
  0xd5   :  { %v410_v48 = vsel %vm355_vm1, %v339_v42, 0.0  ;;  %v352_v49 = vsel %vm58_vm0, %v320_v43, 0.0  ;;  %v338_v57 = vmul.f32 %v279_v31, %v43_v53  ;;  %v247_v59 = vrot.slane %v1502_v46, %v1461_v19  ;;  %v52_v42 = vld [vmem:[%s1870_s1 + $0xd8] sm:$0xf]  ;;  %v51_v43 = vld [vmem:[%s1870_s1 + $0xd0] sm:$0xff] }
  0xd6   :  { %v416_v55 = vsel %vm355_vm1, %v341_v50, 0.0  ;;  %v356_v56 = vsel %vm355_vm1, %v321_v51, 0.0  ;;  %v340_v62 = vmul.f32 %v283_v39, %v45_v58  ;;  %v428_v0 = vsel %vm355_vm1, %v345_v54, 0.0  ;;  %v54_v51 = vld [vmem:[%s1870_s1 + $0xe8] sm:$0xf] }
  0xd7   :  { %v407_v1 = vsel %vm58_vm0, %v338_v57, 0.0  ;;  %v322_v2 = vmul.f32 %v247_v59, %v27_v60  ;;  %v238_v7 = vcombine.high %v1466_v24, %v1466_v24  ;;  %v344_v10 = vmul.f32 %v291_v47, %v49_v3  ;;  %v32_v58 = vld [vmem:[%s1870_s1 + $0x38] sm:$0xf] }
  0xd8   :  { %411 = vadd.xlane.f32.xlu1 %v410_v48  ;;  %353 = vadd.xlane.f32.xlu0 %v352_v49  ;;  %v413_v6 = vsel %vm58_vm0, %v340_v62, 0.0  ;;  %v323_v12 = vmul.f32 %v247_v59, %v28_v4  ;;  %v251_v13 = vrot.slane %v187_v63, %v1461_v19  ;;  %v172_v18 = vrot.slane %v156_v5, %v1458_v15  ;;  %v31_v59 = vld [vmem:[%s1870_s1 + $0x30] sm:$0xff] }
  0xd9   :  { %v359_v8 = vsel %vm58_vm0, %v322_v2, 0.0  ;;  %v287_v20 = vrot.slane %v238_v7, %v1461_v19  ;;  %v425_v21 = vsel %vm58_vm0, %v344_v10, 0.0  ;;  %v1563_v33 = vrot.slane %v207_v17, %v1458_v15  ;;  %v35_v2 = vld [vmem:[%s1870_s1 + $0x50] sm:$0xff]  ;;  %v38_v10 = vld [vmem:[%s1870_s1 + $0x68] sm:$0xf] }
  0xda   :  { %v362_v22 = vsel %vm355_vm1, %v323_v12, 0.0  ;;  %v324_v23 = vmul.f32 %v251_v13, %v29_v14  ;;  %v325_v24 = vmul.f32 %v251_v13, %v30_v16  ;;  %v259_v28 = vrot.slane %v172_v18, %v1461_v19  ;;  %v37_v12 = vld [vmem:[%s1870_s1 + $0x60] sm:$0xff] }
  0xdb   :  { %v342_v27 = vmul.f32 %v287_v20, %v47_v26  ;;  %v343_v31 = vmul.f32 %v287_v20, %v48_v25  ;;  %v295_v40 = vrot.slane %v1563_v33, %v1461_v19  ;;  %v237_v41 = vcombine.high %v1490_v37, %v1490_v37 }
  0xdc   :  { %417 = vadd.xlane.f32.xlu1 %v416_v55  ;;  %357 = vadd.xlane.f32.xlu0 %v356_v56  ;;  %v365_v29 = vsel %vm58_vm0, %v324_v23, 0.0  ;;  %v368_v30 = vsel %vm355_vm1, %v325_v24, 0.0  ;;  %v329_v36 = vmul.f32 %v259_v28, %v34_v32  ;;  %v328_v39 = vmul.f32 %v259_v28, %v33_v34  ;;  %v56_v28 = vld [vmem:[%s1870_s1 + $0xf8] sm:$0xf] }
  0xdd   :  { %v419_v35 = vsel %vm58_vm0, %v342_v27, 0.0  ;;  %v422_v38 = vsel %vm355_vm1, %v343_v31, 0.0  ;;  %v158_v44 = vcombine.high %v156_v5, %v156_v5  ;;  %v189_v47 = vcombine.high %v1502_v46, %v1502_v46 }
  0xde   :  { %v380_v45 = vsel %vm355_vm1, %v329_v36, 0.0  ;;  %v377_v48 = vsel %vm58_vm0, %v328_v39, 0.0  ;;  %v347_v49 = vmul.f32 %v295_v40, %v52_v42  ;;  %v346_v37 = vmul.f32 %v295_v40, %v51_v43 }
  0xdf   :  { %v299_v50 = vrot.slane %v237_v41, %v1461_v19  ;;  %v255_v53 = vrot.slane %v189_v47, %v1461_v19  ;;  %v186_v46 = vrot.slane %v158_v44, %v1458_v15  ;;  %v188_v61 = vcombine.high %v172_v18, %v172_v18 }
  0xe0   :  { %429 = vadd.xlane.f32.xlu1 %v428_v0  ;;  %408 = vadd.xlane.f32.xlu0 %v407_v1  ;;  %v434_v54 = vsel %vm355_vm1, %v347_v49, 0.0  ;;  %v431_v55 = vsel %vm58_vm0, %v346_v37, 0.0  ;;  %v36_v1 = vld [vmem:[%s1870_s1 + $0x58] sm:$0xf]  ;;  %v239_v14 = vcombine.high %v1563_v33, %v1563_v33 }
  0xe1   :  { %v349_v56 = vmul.f32 %v299_v50, %v54_v51  ;;  %v348_v57 = vmul.f32 %v299_v50, %v53_v52  ;;  %v263_v60 = vrot.slane %v186_v46, %v1461_v19  ;;  %v327_v63 = vmul.f32 %v255_v53, %v32_v58 }
  0xe2   :  { %v326_v0 = vmul.f32 %v255_v53, %v31_v59  ;;  %v267_v3 = vrot.slane %v188_v61, %v1461_v19  ;;  %v190_v4 = vcombine.high %v186_v46, %v186_v46  ;;  %v303_v27 = vrot.slane %v239_v14, %v1461_v19 }
  0xe3   :  { %v440_v15 = vsel %vm355_vm1, %v349_v56, 0.0  ;;  %v437_v62 = vsel %vm58_vm0, %v348_v57, 0.0  ;;  %v374_v5 = vsel %vm355_vm1, %v327_v63, 0.0  ;;  %v331_v7 = vmul.f32 %v263_v60, %v36_v1 }
  0xe4   :  { %414 = vadd.xlane.f32.xlu0 %v413_v6  ;;  %360 = vadd.xlane.f32.xlu1 %v359_v8  ;;  %v371_v6 = vsel %vm58_vm0, %v326_v0, 0.0  ;;  %v330_v8 = vmul.f32 %v263_v60, %v35_v2  ;;  %v333_v13 = vmul.f32 %v267_v3, %v38_v10  ;;  %v332_v18 = vmul.f32 %v267_v3, %v37_v12 }
  0xe5   :  { %v386_v16 = vsel %vm355_vm1, %v331_v7, 0.0  ;;  %v271_v20 = vrot.slane %v190_v4, %v1461_v19  ;;  %v351_v32 = vmul.f32 %v303_v27, %v56_v28 }
  0xe6   :  { %v383_v17 = vsel %vm58_vm0, %v330_v8, 0.0  ;;  %v392_v23 = vsel %vm355_vm1, %v333_v13, 0.0  ;;  %v389_v24 = vsel %vm58_vm0, %v332_v18, 0.0 }
  0xe7   :  { %v446_v19 = vsel %vm355_vm1, %v351_v32, 0.0 }
  0xe8   :  { %426 = vadd.xlane.f32.xlu0 %v425_v21  ;;  %363 = vadd.xlane.f32.xlu1 %v362_v22  ;;  %v40_v21 = vld [vmem:[%s1870_s1 + $0x78] sm:$0xf]  ;;  %v39_v22 = vld [vmem:[%s1870_s1 + $0x70] sm:$0xff] }
  0xe9   :  { %v335_v26 = vmul.f32 %v271_v20, %v40_v21  ;;  %v334_v25 = vmul.f32 %v271_v20, %v39_v22 }
  0xeb   :  { %v395_v31 = vsel %vm58_vm0, %v334_v25, 0.0 }
  0xec   :  { %366 = vadd.xlane.f32.xlu0 %v365_v29  ;;  %369 = vadd.xlane.f32.xlu1 %v368_v30  ;;  %v55_v29 = vld [vmem:[%s1870_s1 + $0xf0] sm:$0xff]  ;;  %v398_v30 = vsel %vm355_vm1, %v335_v26, 0.0  ;;  %s1408_s1 = smov [#allocation3]  }
  0xed   :  { %v350_v33 = vmul.f32 %v303_v27, %v55_v29 }
  0xef   :  { %v443_v34 = vsel %vm58_vm0, %v350_v33, 0.0 }
  0xf0   :  { %420 = vadd.xlane.f32.xlu0 %v419_v35  ;;  %423 = vadd.xlane.f32.xlu1 %v422_v38  ;;  %v1646_v35 = vstv %s1872_s3  ;;  %s1116_s3 = sshll.u32 %s1408_s1, 4  ;;  %s1117_s3 = int_to_ptr.vmem [resolvable:$true] %s1116_s3 }
  0xf1   :  { %s1385_s9 = scalar_lea.vmem %s1117_s3, 16  ;;  %s1389_s10 = scalar_lea.vmem %s1117_s3, 32 }
  0xf2   :  { %p1386_p0 = scmp.ne.s32.totalorder %s1117_s3, %s1385_s9  ;;  %p1390_p1 = scmp.lt.s32.totalorder %s1117_s3, %s1117_s3 }
  0xf3   :  { %p1391_p2 = scmp.lt.s32.totalorder %s1389_s10, %s1385_s9 }
  0xf4   :  { %381 = vadd.xlane.f32.xlu1 %v380_v45  ;;  %378 = vadd.xlane.f32.xlu0 %v377_v48 }
  0xf5   :  { %p1392_p3 = por %p1391_p2, %p1390_p1 }
  0xf7   :  { %p1393_p4 = pnand %p1392_p3, %p1386_p0 }
  0xf8   :  { %435 = vadd.xlane.f32.xlu1 %v434_v54  ;;  %432 = vadd.xlane.f32.xlu0 %v431_v55 }
  0xfc   :  { %441 = vadd.xlane.f32.xlu1 %v440_v15  ;;  %438 = vadd.xlane.f32.xlu0 %v437_v62 }
 0x100   :  { %375 = vadd.xlane.f32.xlu1 %v374_v5  ;;  %372 = vadd.xlane.f32.xlu0 %v371_v6 }
 0x104   :  { %387 = vadd.xlane.f32.xlu1 %v386_v16  ;;  %384 = vadd.xlane.f32.xlu0 %v383_v17 }
 0x108   :  { %393 = vadd.xlane.f32.xlu1 %v392_v23  ;;  %390 = vadd.xlane.f32.xlu0 %v389_v24 }
 0x10c   :  { %399 = vadd.xlane.f32.xlu1 %v398_v30  ;;  %396 = vadd.xlane.f32.xlu0 %v395_v31 }
 0x110   :  { %447 = vadd.xlane.f32.xlu1 %v446_v19  ;;  %444 = vadd.xlane.f32.xlu0 %v443_v34 }
 0x15d   :  { %v406_v36 = vpop.xlane.xlu1 %405  ;;  %v403_v38 = vpop.xlane.xlu0 %402 }
 0x15e   :  { %v467_v39 = vadd.f32 %v1646_v35, %v406_v36  ;;  %v466_v40 = vadd.f32 %v1646_v35, %v403_v38 }
 0x160   :  { %v1143_v43 = vmul.f32 -1.442695, %v467_v39  ;;  %v1142_v45 = vmul.f32 -1.442695, %v466_v40 }
 0x161   :  { %v412_v41 = vpop.xlane.xlu1 %411  ;;  %v354_v42 = vpop.xlane.xlu0 %353 }
 0x162   :  { %v469_v44 = vadd.f32 %v1646_v35, %v412_v41  ;;  %v450_v47 = vadd.f32 %v1646_v35, %v354_v42  ;;  %1177 = vpow2.f32 %v1143_v43 }
 0x163   :  { %1179 = vpow2.f32 %v1142_v45 }
 0x164   :  { %v1145_v37 = vmul.f32 -1.442695, %v469_v44  ;;  %v1126_v50 = vmul.f32 -1.442695, %v450_v47 }
 0x165   :  { %v418_v48 = vpop.xlane.xlu1 %417  ;;  %v358_v49 = vpop.xlane.xlu0 %357 }
 0x166   :  { %v471_v51 = vadd.f32 %v1646_v35, %v418_v48  ;;  %v451_v52 = vadd.f32 %v1646_v35, %v358_v49  ;;  %1181 = vpow2.f32 %v1145_v37 }
 0x167   :  { %1183 = vpow2.f32 %v1126_v50 }
 0x168   :  { %v1147_v54 = vmul.f32 -1.442695, %v471_v51  ;;  %v1127_v55 = vmul.f32 -1.442695, %v451_v52 }
 0x169   :  { %v430_v53 = vpop.xlane.xlu1 %429  ;;  %v409_v46 = vpop.xlane.xlu0 %408 }
 0x16a   :  { %1185 = vpow2.f32 %v1147_v54  ;;  %v475_v58 = vadd.f32 %v1646_v35, %v430_v53  ;;  %v468_v59 = vadd.f32 %v1646_v35, %v409_v46 }
 0x16b   :  { %1187 = vpow2.f32 %v1127_v55 }
 0x16c   :  { %v1151_v63 = vmul.f32 -1.442695, %v475_v58  ;;  %v1144_v0 = vmul.f32 -1.442695, %v468_v59 }
 0x16d   :  { %v415_v56 = vpop.xlane.xlu0 %414  ;;  %v361_v57 = vpop.xlane.xlu1 %360 }
 0x16e   :  { %1189 = vpow2.f32 %v1151_v63  ;;  %v470_v7 = vadd.f32 %v1646_v35, %v415_v56  ;;  %v452_v8 = vadd.f32 %v1646_v35, %v361_v57 }
 0x16f   :  { %v1178_v15 = vpop.eup %1177  ;;  %1191 = vpow2.f32 %v1144_v0 }
 0x170   :  { %v1180_v62 = vpop.eup %1179  ;;  %v595_v3 = vadd.f32 1.0, %v1178_v15  ;;  %v1146_v18 = vmul.f32 -1.442695, %v470_v7  ;;  %v1128_v21 = vmul.f32 -1.442695, %v452_v8 }
 0x171   :  { %v427_v60 = vpop.xlane.xlu0 %426  ;;  %v364_v61 = vpop.xlane.xlu1 %363  ;;  %v594_v5 = vadd.f32 1.0, %v1180_v62 }
 0x172   :  { %1193 = vrcp.f32 %v595_v3  ;;  %v474_v13 = vadd.f32 %v1646_v35, %v427_v60  ;;  %v453_v17 = vadd.f32 %v1646_v35, %v364_v61 }
 0x173   :  { %v1182_v4 = vpop.eup %1181  ;;  %1195 = vrcp.f32 %v594_v5 }
 0x174   :  { %v1184_v6 = vpop.eup %1183  ;;  %v597_v12 = vadd.f32 1.0, %v1182_v4  ;;  %v1150_v23 = vmul.f32 -1.442695, %v474_v13  ;;  %v1129_v24 = vmul.f32 -1.442695, %v453_v17 }
 0x175   :  { %v367_v1 = vpop.xlane.xlu0 %366  ;;  %v370_v2 = vpop.xlane.xlu1 %369  ;;  %v578_v16 = vadd.f32 1.0, %v1184_v6 }
 0x176   :  { %1197 = vrcp.f32 %v597_v12  ;;  %v454_v29 = vadd.f32 %v1646_v35, %v367_v1  ;;  %v455_v30 = vadd.f32 %v1646_v35, %v370_v2 }
 0x177   :  { %v1186_v20 = vpop.eup %1185  ;;  %1199 = vrcp.f32 %v578_v16 }
 0x178   :  { %v1188_v22 = vpop.eup %1187  ;;  %v599_v25 = vadd.f32 1.0, %v1186_v20  ;;  %1201 = vpow2.f32 %v1146_v18  ;;  %v1130_v19 = vmul.f32 -1.442695, %v454_v29  ;;  %v1131_v39 = vmul.f32 -1.442695, %v455_v30 }
 0x179   :  { %v424_v10 = vpop.xlane.xlu1 %423  ;;  %v421_v14 = vpop.xlane.xlu0 %420  ;;  %v579_v28 = vadd.f32 1.0, %v1188_v22  ;;  %1203 = vpow2.f32 %v1128_v21 }
 0x17a   :  { %1205 = vpow2.f32 %v1150_v23  ;;  %v472_v34 = vadd.f32 %v1646_v35, %v421_v14  ;;  %v473_v40 = vadd.f32 %v1646_v35, %v424_v10 }
 0x17b   :  { %1207 = vpow2.f32 %v1129_v24  ;;  %v1190_v31 = vpop.eup %1189 }
 0x17c   :  { %1209 = vrcp.f32 %v599_v25  ;;  %v1192_v33 = vpop.eup %1191  ;;  %v603_v42 = vadd.f32 1.0, %v1190_v31  ;;  %v1148_v48 = vmul.f32 -1.442695, %v472_v34  ;;  %v1149_v50 = vmul.f32 -1.442695, %v473_v40 }
 0x17d   :  { %v382_v26 = vpop.xlane.xlu1 %381  ;;  %v379_v27 = vpop.xlane.xlu0 %378  ;;  %1211 = vrcp.f32 %v579_v28  ;;  %v596_v44 = vadd.f32 1.0, %v1192_v33 }
 0x17e   :  { %v459_v43 = vadd.f32 %v1646_v35, %v382_v26  ;;  %v458_v45 = vadd.f32 %v1646_v35, %v379_v27  ;;  %1213 = vpow2.f32 %v1130_v19 }
 0x17f   :  { %v1194_v38 = vpop.eup %1193  ;;  %1215 = vpow2.f32 %v1131_v39 }
 0x180   :  { %v1196_v41 = vpop.eup %1195  ;;  %v691_v47 = vmul.f32 2.0, %v1194_v38  ;;  %1217 = vrcp.f32 %v603_v42  ;;  %v1135_v53 = vmul.f32 -1.442695, %v459_v43  ;;  %v1134_v55 = vmul.f32 -1.442695, %v458_v45 }
 0x181   :  { %v436_v32 = vpop.xlane.xlu1 %435  ;;  %v433_v36 = vpop.xlane.xlu0 %432  ;;  %v690_v37 = vmul.f32 2.0, %v1196_v41  ;;  %1219 = vrcp.f32 %v596_v44 }
 0x182   :  { %v740_v57 = vmul.f32 1.442695, %v691_v47  ;;  %1221 = vpow2.f32 %v1148_v48  ;;  %v477_v4 = vadd.f32 %v1646_v35, %v436_v32  ;;  %v476_v7 = vadd.f32 %v1646_v35, %v433_v36 }
 0x183   :  { %v1198_v49 = vpop.eup %1197  ;;  %v738_v60 = vmul.f32 1.442695, %v690_v37  ;;  %1223 = vpow2.f32 %v1149_v50 }
 0x184   :  { %v1200_v52 = vpop.eup %1199  ;;  %v693_v58 = vmul.f32 2.0, %v1198_v49  ;;  %1225 = vpow2.f32 %v1135_v53  ;;  %v1153_v14 = vmul.f32 -1.442695, %v477_v4  ;;  %v1152_v18 = vmul.f32 -1.442695, %v476_v7 }
 0x185   :  { %v442_v51 = vpop.xlane.xlu1 %441  ;;  %v1666_v46 = vpop.xlane.xlu0 %438  ;;  %v674_v61 = vmul.f32 2.0, %v1200_v52  ;;  %1227 = vpow2.f32 %v1134_v55 }
 0x186   :  { %v1202_v54 = vpop.eup %1201  ;;  %1229 = vpow2.f32 %v740_v57  ;;  %v744_v3 = vmul.f32 1.442695, %v693_v58  ;;  %v479_v28 = vadd.f32 %v1646_v35, %v442_v51  ;;  %v478_v47 = vadd.f32 %v1646_v35, %v1666_v46 }
 0x187   :  { %v1204_v56 = vpop.eup %1203  ;;  %v598_v62 = vadd.f32 1.0, %v1202_v54  ;;  %1231 = vpow2.f32 %v738_v60  ;;  %v706_v6 = vmul.f32 1.442695, %v674_v61 }
 0x188   :  { %v1206_v59 = vpop.eup %1205  ;;  %v580_v0 = vadd.f32 1.0, %v1204_v56  ;;  %v1155_v43 = vmul.f32 -1.442695, %v479_v28  ;;  %v1154_v55 = vmul.f32 -1.442695, %v478_v47 }
 0x189   :  { %v1208_v15 = vpop.eup %1207  ;;  %v376_v1 = vpop.xlane.xlu1 %375  ;;  %1233 = vrcp.f32 %v598_v62  ;;  %v602_v10 = vadd.f32 1.0, %v1206_v59 }
 0x18a   :  { %v1210_v63 = vpop.eup %1209  ;;  %v373_v5 = vpop.xlane.xlu0 %372  ;;  %1235 = vrcp.f32 %v580_v0  ;;  %v581_v13 = vadd.f32 1.0, %v1208_v15  ;;  %v457_v16 = vadd.f32 %v1646_v35, %v376_v1 }
 0x18b   :  { %v1212_v2 = vpop.eup %1211  ;;  %v695_v8 = vmul.f32 2.0, %v1210_v63  ;;  %1237 = vpow2.f32 %v744_v3  ;;  %v456_v20 = vadd.f32 %v1646_v35, %v373_v5 }
 0x18c   :  { %v675_v12 = vmul.f32 2.0, %v1212_v2  ;;  %v1214_v17 = vpop.eup %1213  ;;  %1239 = vpow2.f32 %v706_v6  ;;  %v1133_v29 = vmul.f32 -1.442695, %v457_v16 }
 0x18d   :  { %v388_v21 = vpop.xlane.xlu1 %387  ;;  %v1216_v22 = vpop.eup %1215  ;;  %v748_v23 = vmul.f32 1.442695, %v695_v8  ;;  %1241 = vrcp.f32 %v602_v10  ;;  %v1132_v31 = vmul.f32 -1.442695, %v456_v20  ;;  %v582_v19 = vadd.f32 1.0, %v1214_v17 }
 0x18e   :  { %v385_v24 = vpop.xlane.xlu0 %384  ;;  %v1218_v26 = vpop.eup %1217  ;;  %v708_v25 = vmul.f32 1.442695, %v675_v12  ;;  %1243 = vrcp.f32 %v581_v13  ;;  %v461_v34 = vadd.f32 %v1646_v35, %v388_v21  ;;  %v583_v39 = vadd.f32 1.0, %v1216_v22 }
 0x18f   :  { %v1220_v27 = vpop.eup %1219  ;;  %1245 = vpow2.f32 %v1153_v14  ;;  %v460_v32 = vadd.f32 %v1646_v35, %v385_v24  ;;  %v699_v38 = vmul.f32 2.0, %v1218_v26 }
 0x190   :  { %v1222_v30 = vpop.eup %1221  ;;  %1247 = vpow2.f32 %v1152_v18  ;;  %v692_v42 = vmul.f32 2.0, %v1220_v27  ;;  %v1137_v37 = vmul.f32 -1.442695, %v461_v34 }
 0x191   :  { %v1224_v33 = vpop.eup %1223  ;;  %1249 = vpow2.f32 %v748_v23  ;;  %v394_v40 = vpop.xlane.xlu1 %393  ;;  %v1136_v48 = vmul.f32 -1.442695, %v460_v32  ;;  %v756_v51 = vmul.f32 1.442695, %v699_v38  ;;  %v600_v46 = vadd.f32 1.0, %v1222_v30 }
 0x192   :  { %v1226_v36 = vpop.eup %1225  ;;  %1251 = vpow2.f32 %v708_v25  ;;  %v391_v44 = vpop.xlane.xlu0 %390  ;;  %v742_v53 = vmul.f32 1.442695, %v692_v42  ;;  %v463_v58 = vadd.f32 %v1646_v35, %v394_v40  ;;  %v601_v61 = vadd.f32 1.0, %v1224_v33 }
 0x193   :  { %v1228_v41 = vpop.eup %1227  ;;  %1253 = vpow2.f32 %v1133_v29  ;;  %v462_v15 = vadd.f32 %v1646_v35, %v391_v44  ;;  %v587_v63 = vadd.f32 1.0, %v1226_v36 }
 0x194   :  { %v1675_v45 = vpop.eup %1229  ;;  %1255 = vpow2.f32 %v1132_v31  ;;  %v586_v1 = vadd.f32 1.0, %v1228_v41  ;;  %v1139_v3 = vmul.f32 -1.442695, %v463_v58 }
 0x195   :  { %v1679_v49 = vpop.eup %1231  ;;  %1257 = vrcp.f32 %v582_v19  ;;  %v400_v56 = vpop.xlane.xlu1 %399  ;;  %v1138_v6 = vmul.f32 -1.442695, %v462_v15 }
 0x196   :  { %v1234_v50 = vpop.eup %1233  ;;  %1259 = vrcp.f32 %v583_v39  ;;  %v397_v59 = vpop.xlane.xlu0 %396  ;;  %v465_v4 = vadd.f32 %v1646_v35, %v400_v56 }
 0x197   :  { %v1236_v52 = vpop.eup %1235  ;;  %1261 = vpow2.f32 %v1155_v43  ;;  %v464_v7 = vadd.f32 %v1646_v35, %v397_v59  ;;  %v694_v31 = vmul.f32 2.0, %v1234_v50 }
 0x198   :  { %v1681_v54 = vpop.eup %1237  ;;  %1263 = vpow2.f32 %v1136_v48  ;;  %v1141_v18 = vmul.f32 -1.442695, %v465_v4  ;;  %v676_v19 = vmul.f32 2.0, %v1236_v52 }
 0x199   :  { %v1683_v57 = vpop.eup %1239  ;;  %1265 = vpow2.f32 %v1137_v37  ;;  %v448_v8 = vpop.xlane.xlu1 %447  ;;  %v1140_v22 = vmul.f32 -1.442695, %v464_v7  ;;  %v746_v42 = vmul.f32 1.442695, %v694_v31 }
 0x19a   :  { %v1242_v60 = vpop.eup %1241  ;;  %1267 = vpow2.f32 %v756_v51  ;;  %v445_v13 = vpop.xlane.xlu0 %444  ;;  %v481_v20 = vadd.f32 %v1646_v35, %v448_v8  ;;  %v710_v47 = vmul.f32 1.442695, %v676_v19 }
 0x19b   :  { %v1244_v62 = vpop.eup %1243  ;;  %1269 = vpow2.f32 %v742_v53  ;;  %v480_v23 = vadd.f32 %v1646_v35, %v445_v13  ;;  %v698_v39 = vmul.f32 2.0, %v1242_v60 }
 0x19c   :  { %v1246_v0 = vpop.eup %1245  ;;  %1271 = vpow2.f32 %v1154_v55  ;;  %v1157_v29 = vmul.f32 -1.442695, %v481_v20  ;;  %v677_v43 = vmul.f32 2.0, %v1244_v62 }
 0x19d   :  { %v1248_v2 = vpop.eup %1247  ;;  %1273 = vrcp.f32 %v600_v46  ;;  %v605_v12 = vadd.f32 1.0, %v1246_v0  ;;  %v1156_v32 = vmul.f32 -1.442695, %v480_v23  ;;  %v754_v51 = vmul.f32 1.442695, %v698_v39 }
 0x19e   :  { %v1688_v5 = vpop.eup %1249  ;;  %1275 = vrcp.f32 %v601_v61  ;;  %v604_v16 = vadd.f32 1.0, %v1248_v2  ;;  %v712_v55 = vmul.f32 1.442695, %v677_v43 }
 0x19f   :  { %v1691_v10 = vpop.eup %1251  ;;  %1277 = vrcp.f32 %v587_v63 }
 0x1a0   :  { %v1254_v14 = vpop.eup %1253  ;;  %1279 = vrcp.f32 %v586_v1 }
 0x1a1   :  { %v1256_v17 = vpop.eup %1255  ;;  %1281 = vpow2.f32 %v1139_v3  ;;  %v585_v26 = vadd.f32 1.0, %v1254_v14 }
 0x1a2   :  { %v1258_v21 = vpop.eup %1257  ;;  %1283 = vpow2.f32 %v1138_v6  ;;  %v584_v27 = vadd.f32 1.0, %v1256_v17 }
 0x1a3   :  { %v1260_v24 = vpop.eup %1259  ;;  %1285 = vrcp.f32 %v605_v12  ;;  %v678_v52 = vmul.f32 2.0, %v1258_v21 }
 0x1a4   :  { %v1262_v25 = vpop.eup %1261  ;;  %1287 = vrcp.f32 %v604_v16  ;;  %v679_v56 = vmul.f32 2.0, %v1260_v24 }
 0x1a5   :  { %v1264_v28 = vpop.eup %1263  ;;  %1289 = vpow2.f32 %v1141_v18  ;;  %v607_v34 = vadd.f32 1.0, %v1262_v25  ;;  %v714_v15 = vmul.f32 1.442695, %v678_v52 }
 0x1a6   :  { %v1266_v30 = vpop.eup %1265  ;;  %1291 = vpow2.f32 %v1140_v22  ;;  %v588_v35 = vadd.f32 1.0, %v1264_v28  ;;  %v716_v0 = vmul.f32 1.442695, %v679_v56 }
 0x1a7   :  { %v1695_v33 = vpop.eup %1267  ;;  %1293 = vrcp.f32 %v585_v26  ;;  %v589_v40 = vadd.f32 1.0, %v1266_v30 }
 0x1a8   :  { %v1697_v36 = vpop.eup %1269  ;;  %1295 = vrcp.f32 %v584_v27 }
 0x1a9   :  { %v1272_v38 = vpop.eup %1271  ;;  %1297 = vpow2.f32 %v1157_v29 }
 0x1aa   :  { %v1274_v41 = vpop.eup %1273  ;;  %1299 = vpow2.f32 %v1156_v32  ;;  %v606_v37 = vadd.f32 1.0, %v1272_v38 }
 0x1ab   :  { %v1276_v44 = vpop.eup %1275  ;;  %1301 = vrcp.f32 %v607_v34  ;;  %v696_v62 = vmul.f32 2.0, %v1274_v41 }
 0x1ac   :  { %v1278_v48 = vpop.eup %1277  ;;  %1303 = vrcp.f32 %v588_v35  ;;  %v697_v1 = vmul.f32 2.0, %v1276_v44 }
 0x1ad   :  { %v1280_v50 = vpop.eup %1279  ;;  %1305 = vrcp.f32 %v589_v40  ;;  %v750_v8 = vmul.f32 1.442695, %v696_v62  ;;  %v683_v12 = vmul.f32 2.0, %v1278_v48 }
 0x1ae   :  { %v1282_v53 = vpop.eup %1281  ;;  %1307 = vpow2.f32 %v746_v42  ;;  %v752_v14 = vmul.f32 1.442695, %v697_v1  ;;  %v682_v16 = vmul.f32 2.0, %v1280_v50 }
 0x1af   :  { %v1284_v46 = vpop.eup %1283  ;;  %1309 = vpow2.f32 %v710_v47  ;;  %v591_v58 = vadd.f32 1.0, %v1282_v53  ;;  %v724_v26 = vmul.f32 1.442695, %v683_v12  ;;  %v918_v12 = vrot.slane %v1679_v49, %v1456_v11 }
 0x1b0   :  { %v1286_v59 = vpop.eup %1285  ;;  %1311 = vrcp.f32 %v606_v37  ;;  %v590_v60 = vadd.f32 1.0, %v1284_v46  ;;  %v722_v28 = vmul.f32 1.442695, %v682_v16 }
 0x1b1   :  { %v1288_v61 = vpop.eup %1287  ;;  %1313 = vpow2.f32 %v754_v51  ;;  %v701_v18 = vmul.f32 2.0, %v1286_v59 }
 0x1b2   :  { %v1290_v63 = vpop.eup %1289  ;;  %1315 = vpow2.f32 %v712_v55  ;;  %v700_v25 = vmul.f32 2.0, %v1288_v61 }
 0x1b3   :  { %v1292_v2 = vpop.eup %1291  ;;  %1317 = vrcp.f32 %v591_v58  ;;  %v593_v3 = vadd.f32 1.0, %v1290_v63  ;;  %v760_v31 = vmul.f32 1.442695, %v701_v18 }
 0x1b4   :  { %v1294_v4 = vpop.eup %1293  ;;  %1319 = vrcp.f32 %v590_v60  ;;  %v592_v6 = vadd.f32 1.0, %v1292_v2  ;;  %v758_v39 = vmul.f32 1.442695, %v700_v25 }
 0x1b5   :  { %v1296_v7 = vpop.eup %1295  ;;  %1321 = vpow2.f32 %v714_v15  ;;  %v681_v29 = vmul.f32 2.0, %v1294_v4  ;;  %v1020_v4 = vrot.slane %v1675_v45, %v1454_v9  ;;  %v886_v45 = vrot.slane %v1683_v57, %v1456_v11 }
 0x1b6   :  { %v1298_v13 = vpop.eup %1297  ;;  %1323 = vpow2.f32 %v716_v0  ;;  %v680_v22 = vmul.f32 2.0, %v1296_v7 }
 0x1b7   :  { %v1300_v17 = vpop.eup %1299  ;;  %1325 = vrcp.f32 %v593_v3  ;;  %v609_v20 = vadd.f32 1.0, %v1298_v13  ;;  %v720_v42 = vmul.f32 1.442695, %v681_v29  ;;  %v823_v13 = vrot.slane %v1679_v49, %v1454_v9 }
 0x1b8   :  { %v1302_v21 = vpop.eup %1301  ;;  %1327 = vrcp.f32 %v592_v6  ;;  %v608_v23 = vadd.f32 1.0, %v1300_v17  ;;  %v718_v34 = vmul.f32 1.442695, %v680_v22  ;;  %v1024_v6 = vrot.slane %v1681_v54, %v1454_v9 }
 0x1b9   :  { %v1304_v24 = vpop.eup %1303  ;;  %1329 = vpow2.f32 %v750_v8  ;;  %v703_v32 = vmul.f32 2.0, %v1302_v21  ;;  %v1028_v54 = vrot.slane %v1688_v5, %v1454_v9  ;;  %v922_v49 = vrot.slane %v1697_v36, %v1456_v11 }
 0x1ba   :  { %v1306_v27 = vpop.eup %1305  ;;  %1331 = vpow2.f32 %v752_v14  ;;  %v684_v35 = vmul.f32 2.0, %v1304_v24  ;;  %v791_v21 = vrot.slane %v1683_v57, %v1454_v9  ;;  %v1056_v5 = vsel %vm852_vm2, %v1024_v6, %v1020_v4 }
 0x1bb   :  { %v1699_v30 = vpop.eup %1307  ;;  %1333 = vrcp.f32 %v609_v20  ;;  %v685_v40 = vmul.f32 2.0, %v1306_v27  ;;  %v764_v44 = vmul.f32 1.442695, %v703_v32  ;;  %v988_v20 = vrot.slane %v1691_v10, %v1454_v9 }
 0x1bc   :  { %v1701_v19 = vpop.eup %1309  ;;  %1335 = vrcp.f32 %v608_v23  ;;  %v726_v37 = vmul.f32 1.442695, %v684_v35  ;;  %v926_v24 = vrot.slane %v1699_v30, %v1456_v11  ;;  %v831_v27 = vrot.slane %v1699_v30, %v1454_v9 }
 0x1bd   :  { %v1312_v38 = vpop.eup %1311  ;;  %1337 = vpow2.f32 %v724_v26  ;;  %v728_v51 = vmul.f32 1.442695, %v685_v40  ;;  %v827_v26 = vrot.slane %v1697_v36, %v1454_v9  ;;  %v890_v10 = vrot.slane %v1701_v19, %v1456_v11 }
 0x1be   :  { %v1703_v41 = vpop.eup %1313  ;;  %1339 = vpow2.f32 %v722_v28  ;;  %v702_v48 = vmul.f32 2.0, %v1312_v38  ;;  %v795_v57 = vrot.slane %v1701_v19, %v1454_v9  ;;  %v1036_v36 = vrot.slane %v1695_v33, %v1454_v9 }
 0x1bf   :  { %v1705_v43 = vpop.eup %1315  ;;  %1341 = vpow2.f32 %v760_v31  ;;  %v1057_v31 = vsel %vm854_vm3, %v1028_v54, %v1056_v5 }
 0x1c0   :  { %v1318_v47 = vpop.eup %1317  ;;  %1343 = vpow2.f32 %v718_v34  ;;  %v762_v59 = vmul.f32 1.442695, %v702_v48  ;;  %v992_v30 = vrot.slane %v1705_v43, %v1454_v9  ;;  %v954_v34 = vsel %vm852_vm2, %v922_v49, %v918_v12 }
 0x1c1   :  { %v1320_v50 = vpop.eup %1319  ;;  %1345 = vpow2.f32 %v758_v39  ;;  %v687_v52 = vmul.f32 2.0, %v1318_v47  ;;  %v947_v47 = vsel %vm852_vm2, %v890_v10, %v886_v45  ;;  %v853_v48 = vsel %vm852_vm2, %v795_v57, %v791_v21 }
 0x1c2   :  { %v1707_v53 = vpop.eup %1321  ;;  %1347 = vpow2.f32 %v720_v42  ;;  %v686_v55 = vmul.f32 2.0, %v1320_v50  ;;  %v955_v42 = vsel %vm854_vm3, %v926_v24, %v954_v34 }
 0x1c3   :  { %v1709_v56 = vpop.eup %1323  ;;  %1349 = vpow2.f32 %v764_v44  ;;  %v732_v46 = vmul.f32 1.442695, %v687_v52  ;;  %v894_v19 = vrot.slane %v1707_v53, %v1456_v11  ;;  %v799_v35 = vrot.slane %v1707_v53, %v1454_v9 }
 0x1c4   :  { %v1326_v58 = vpop.eup %1325  ;;  %1351 = vpow2.f32 %v726_v37  ;;  %v730_v60 = vmul.f32 1.442695, %v686_v55  ;;  %v996_v40 = vrot.slane %v1709_v56, %v1454_v9  ;;  %v866_v44 = vsel %vm852_vm2, %v827_v26, %v823_v13 }
 0x1c5   :  { %v1328_v61 = vpop.eup %1327  ;;  %1353 = vpow2.f32 %v728_v51  ;;  %v689_v15 = vmul.f32 2.0, %v1326_v58  ;;  %v867_v50 = vsel %vm854_vm3, %v831_v27, %v866_v44  ;;  %v934_v53 = vrot.slane %v1703_v41, %v1456_v11 }
 0x1c6   :  { %v1711_v62 = vpop.eup %1329  ;;  %1355 = vpow2.f32 %v730_v60  ;;  %v688_v63 = vmul.f32 2.0, %v1328_v61  ;;  %v839_v56 = vrot.slane %v1703_v41, %v1454_v9  ;;  %v948_v58 = vsel %vm854_vm3, %v894_v19, %v947_v47 }
 0x1c7   :  { %v1713_v0 = vpop.eup %1331  ;;  %1357 = vpow2.f32 %v732_v46  ;;  %v736_v1 = vmul.f32 1.442695, %v689_v15  ;;  %v930_v29 = vrot.slane %v1711_v62, %v1456_v11  ;;  %v835_v37 = vrot.slane %v1711_v62, %v1454_v9 }
 0x1c8   :  { %v1334_v2 = vpop.eup %1333  ;;  %1359 = vpow2.f32 %v762_v59  ;;  %v734_v3 = vmul.f32 1.442695, %v688_v63  ;;  %v1049_v59 = vsel %vm852_vm2, %v992_v30, %v988_v20  ;;  %v855_v60 = vsel %vm854_vm3, %v799_v35, %v853_v48 }
 0x1c9   :  { %v1336_v7 = vpop.eup %1335  ;;  %1361 = vpow2.f32 %v736_v1  ;;  %v705_v8 = vmul.f32 2.0, %v1334_v2  ;;  %v956_v55 = vsel %vm856_vm4, %v930_v29, %v955_v42  ;;  %v1032_v61 = vrot.slane %v1713_v0, %v1454_v9 }
 0x1ca   :  { %v1723_v14 = vpop.eup %1337  ;;  %1363 = vpow2.f32 %v734_v3  ;;  %v704_v16 = vmul.f32 2.0, %v1336_v7  ;;  %v1050_v2 = vsel %vm854_vm3, %v996_v40, %v1049_v59  ;;  %v957_v7 = vsel %vm858_vm5, %v934_v53, %v956_v55 }
 0x1cb   :  { %v1729_v17 = vpop.eup %1339  ;;  %v768_v18 = vmul.f32 1.442695, %v705_v8  ;;  %v1004_v1 = vrot.slane %v1723_v14, %v1454_v9  ;;  %v868_v0 = vsel %vm856_vm4, %v835_v37, %v867_v50  ;;  %v1058_v49 = vsel %vm856_vm4, %v1032_v61, %v1057_v31 }
 0x1cc   :  { %v1737_v22 = vpop.eup %1341  ;;  %v766_v23 = vmul.f32 1.442695, %v704_v16  ;;  %v902_v4 = vrot.slane %v1729_v17, %v1456_v11  ;;  %v807_v16 = vrot.slane %v1729_v17, %v1454_v9  ;;  %v1059_v47 = vsel %vm858_vm5, %v1036_v36, %v1058_v49 }
 0x1cd   :  { %v1744_v25 = vpop.eup %1343  ;;  %1365 = vpow2.f32 %v768_v18  ;;  %v1040_v5 = vrot.slane %v1737_v22, %v1454_v9 }
 0x1ce   :  { %v1752_v28 = vpop.eup %1345  ;;  %1367 = vpow2.f32 %v766_v23  ;;  %v898_v39 = vrot.slane %v1744_v25, %v1456_v11  ;;  %v803_v14 = vrot.slane %v1744_v25, %v1454_v9 }
 0x1cf   :  { %v1348_v32 = vpop.eup %1347  ;;  %v938_v20 = vrot.slane %v1752_v28, %v1456_v11  ;;  %v843_v48 = vrot.slane %v1752_v28, %v1454_v9  ;;  %v1060_v50 = vsel %vm860_vm6, %v1040_v5, %v1059_v47 }
 0x1d0   :  { %v1766_v38 = vpop.eup %1349  ;;  %v1000_v52 = vrot.slane %v1348_v32, %v1454_v9  ;;  %v949_v63 = vsel %vm856_vm4, %v898_v39, %v948_v58  ;;  %v857_v32 = vsel %vm856_vm4, %v803_v14, %v855_v60  ;;  %v869_v58 = vsel %vm858_vm5, %v839_v56, %v868_v0 }
 0x1d1   :  { %v1774_v43 = vpop.eup %1351  ;;  %v950_v54 = vsel %vm858_vm5, %v902_v4, %v949_v63  ;;  %v1044_v10 = vrot.slane %v1766_v38, %v1454_v9  ;;  %v958_v34 = vsel %vm860_vm6, %v938_v20, %v957_v7  ;;  %v870_v59 = vsel %vm860_vm6, %v843_v48, %v869_v58 }
 0x1d2   :  { %v1354_v51 = vpop.eup %1353  ;;  %v906_v62 = vrot.slane %v1774_v43, %v1456_v11  ;;  %v1051_v13 = vsel %vm856_vm4, %v1000_v52, %v1050_v2  ;;  %v811_v31 = vrot.slane %v1774_v43, %v1454_v9  ;;  %v859_v43 = vsel %vm858_vm5, %v807_v16, %v857_v32 }
 0x1d3   :  { %v1356_v46 = vpop.eup %1355  ;;  %v1008_v12 = vrot.slane %v1354_v51, %v1454_v9  ;;  %v1052_v26 = vsel %vm858_vm5, %v1004_v1, %v1051_v13  ;;  %v1061_v33 = vsel %vm862_vm8, %v1044_v10, %v1060_v50 }
 0x1d4   :  { %v1358_v15 = vpop.eup %1357  ;;  %v910_v6 = vrot.slane %v1356_v46, %v1456_v11  ;;  %v951_v23 = vsel %vm860_vm6, %v906_v62, %v950_v54  ;;  %v815_v35 = vrot.slane %v1356_v46, %v1454_v9 }
 0x1d5   :  { %v1360_v3 = vpop.eup %1359  ;;  %v1012_v18 = vrot.slane %v1358_v15, %v1454_v9  ;;  %v1053_v29 = vsel %vm860_vm6, %v1008_v12, %v1052_v26 }
 0x1d6   :  { %v1362_v8 = vpop.eup %1361  ;;  %v952_v17 = vsel %vm862_vm8, %v910_v6, %v951_v23  ;;  %v942_v25 = vrot.slane %v1360_v3, %v1456_v11  ;;  %v847_v51 = vrot.slane %v1360_v3, %v1454_v9 }
 0x1d7   :  { %v1364_v45 = vpop.eup %1363  ;;  %v1016_v24 = vrot.slane %v1362_v8, %v1454_v9  ;;  %v1054_v30 = vsel %vm862_vm8, %v1012_v18, %v1053_v29 }
 0x1d8   :  { %v914_v21 = vrot.slane %v1364_v45, %v1456_v11  ;;  %v819_v40 = vrot.slane %v1364_v45, %v1454_v9  ;;  %v959_v44 = vsel %vm862_vm8, %v942_v25, %v958_v34  ;;  %v871_v15 = vsel %vm862_vm8, %v847_v51, %v870_v59 }
 0x1d9   :  { %v1055_v38 = vsel %vm864_vm7, %v1016_v24, %v1054_v30 }
 0x1da   :  { %v1366_v57 = vpop.eup %1365  ;;  %v953_v27 = vsel %vm864_vm7, %v914_v21, %v952_v17  ;;  %v1065_v52 = vsel %vm875_vm9, %v1055_v38, 0.0 }
 0x1db   :  { %v1368_v22 = vpop.eup %1367  ;;  %v963_v19 = vsel %vm875_vm9, %v953_v27, 0.0  ;;  %v1048_v42 = vrot.slane %v1366_v57, %v1454_v9 }
 0x1dc   :  { %964 = vadd.xlane.f32.xlu0 %v963_v19  ;;  %v946_v39 = vrot.slane %v1368_v22, %v1456_v11  ;;  %v861_v11 = vsel %vm860_vm6, %v811_v31, %v859_v43  ;;  %v851_v46 = vrot.slane %v1368_v22, %v1454_v9 }
 0x1dd   :  { %v863_v55 = vsel %vm862_vm8, %v815_v35, %v861_v11  ;;  %v1062_v36 = vsel %vm864_vm7, %v1048_v42, %v1061_v33 }
 0x1de   :  { %v960_v37 = vsel %vm864_vm7, %v946_v39, %v959_v44  ;;  %v865_v28 = vsel %vm864_vm7, %v819_v40, %v863_v55  ;;  %v1068_v61 = vsel %vm875_vm9, %v1062_v36, 0.0  ;;  %v872_v62 = vsel %vm864_vm7, %v851_v46, %v871_v15 }
 0x1df   :  { %v966_v53 = vsel %vm875_vm9, %v960_v37, 0.0  ;;  %v876_v60 = vsel %vm875_vm9, %v865_v28, 0.0  ;;  %v879_v63 = vsel %vm875_vm9, %v872_v62, 0.0 }
 0x1e0   :  { %1066 = vadd.xlane.f32.xlu0 %v1065_v52  ;;  %967 = vadd.xlane.f32.xlu1 %v966_v53 }
 0x1e4   :  { %877 = vadd.xlane.f32.xlu0 %v876_v60  ;;  %1069 = vadd.xlane.f32.xlu1 %v1068_v61 }
 0x1e8   :  { %880 = vadd.xlane.f32.xlu1 %v879_v63 }
 0x265   :  { %v965_v1 = vpop.xlane.xlu0 %964 }
 0x269   :  { %v968_v2 = vpop.xlane.xlu1 %967  ;;  %v1067_v9 = vpop.xlane.xlu0 %1066 }
 0x26a   :  { %v1071_v41 = vadd.f32 %v1067_v9, %v965_v1 }
 0x26c   :  { %1369 = vrcp.f32 %v1071_v41 }
 0x26d   :  { %v1070_v56 = vpop.xlane.xlu1 %1069  ;;  %v878_v3 = vpop.xlane.xlu0 %877 }
 0x26e   :  { %v1072_v4 = vadd.f32 %v1070_v56, %v968_v2  ;;  %v1073_v6 = vadd.f32 %v1071_v41, %v878_v3 }
 0x270   :  { %1371 = vrcp.f32 %v1072_v4 }
 0x271   :  { %1373 = vrcp.f32 %v1073_v6  ;;  %v881_v7 = vpop.xlane.xlu1 %880 }
 0x272   :  { %v1074_v0 = vadd.f32 %v1072_v4, %v881_v7 }
 0x274   :  { %1375 = vrcp.f32 %v1074_v0 }
 0x279   :  { %v1370_v8 = vpop.eup %1369 }
 0x27a   :  { %v1088_v12 = vmul.f32 %v1370_v8, %v965_v1 }
 0x27c   :  { %v1091_v54 = vmin.f32 %v1088_v12, 0.9 }
 0x27d   :  { %v1372_v13 = vpop.eup %1371 }
 0x27e   :  { %v1374_v14 = vpop.eup %1373  ;;  %v1090_v16 = vmul.f32 %v1372_v13, %v968_v2 }
 0x27f   :  { %v1076_v45 = vmul.f32 %v1374_v14, %v878_v3 }
 0x280   :  { %v1092_v49 = vmin.f32 %v1090_v16, 0.9 }
 0x281   :  { %v1376_v18 = vpop.eup %1375  ;;  %v1079_v20 = vmin.f32 %v1076_v45, 0.9 }
 0x282   :  { %v1078_v21 = vmul.f32 %v1376_v18, %v881_v7 }
 0x283   :  { %1377 = vlog2.f32 %v1079_v20 }
 0x284   :  { %1379 = vlog2.f32 %v1091_v54  ;;  %v1080_v23 = vmin.f32 %v1078_v21, 0.9 }
 0x285   :  { %1381 = vlog2.f32 %v1092_v49 }
 0x286   :  { %1383 = vlog2.f32 %v1080_v23 }
 0x290   :  { %v1378_v24 = vpop.eup %1377 }
 0x291   :  { %v1380_v5 = vpop.eup %1379  ;;  %v1082_v17 = vmul.f32 0.6931472, %v1378_v24 }
 0x292   :  { %v1382_v26 = vpop.eup %1381  ;;  %v1094_v57 = vmul.f32 0.6931472, %v1380_v5 }
 0x293   :  { %v1384_v25 = vpop.eup %1383  ;;  %v1085_v10 = vsub.f32 0.0, %v1082_v17  ;;  %v1096_v31 = vmul.f32 0.6931472, %v1382_v26 }
 0x294   :  { %v1084_v27 = vmul.f32 0.6931472, %v1384_v25 }
 0x295   :  { %v1097_v29 = vsub.f32 %v1085_v10, %v1094_v57 }
 0x296   :  { %v1086_v32 = vsub.f32 0.0, %v1084_v27 }
 0x297   :  { %v1099_v19 = vmul.f32 0.5, %v1097_v29 }
 0x298   :  { %v1098_v22 = vsub.f32 %v1086_v32, %v1096_v31 }
 0x29a   :  { %v1100_v30 = vmul.f32 0.5, %v1098_v22 }
 0x29c   :  { %v1101_v34 = vadd.f32 %v1100_v30, %v1099_v19 }
 0x29e   :  { %v1102_v35 = vrot.slane %v1101_v34, 4 }
 0x2a0   :  { %v1103_v38 = vadd.f32 %v1102_v35, %v1101_v34 }
 0x2a2   :  { %v1104_v39 = vrot.slane %v1103_v38, 2 }
 0x2a4   :  { %v1105_v40 = vadd.f32 %v1104_v39, %v1103_v38 }
 0x2a6   :  { %v1106_v42 = vrot.slane %v1105_v40, 1 }
 0x2a8   :  { %v1107_v44 = vadd.f32 %v1106_v42, %v1105_v40 }
 0x2aa   :  { %1109 = vst.msk [vmem:[#allocation3] sm:$0x1] %vm1108_vm10, %v1107_v44 }
 0x2ab   :  { %1396 = shalt.err (!%p1393_p4)
}
 0x2ac   :  { %1119 = dma.vmem_to_hbm [thread:$0]  %s1117_s3, 16, %s1873_s4, [#allocation4]  }
 0x2ad   :  { %1405 = dma.done.wait [#allocation4], 16  }
 0x2ae   :  { %1406 = vsyncadd [#allocation4], 4294967280 }
 0x2af   :  { %1123 = vsyncpa [#allocation4], 1 }

</bundles_post_ra>
